<compile_context>
chip_gen: v5e
topology: v5e:2x2
jax: 0.10.0
libtpu: 0.0.40
codegen_flags: <defaults>
</compile_context>

<pallas_src>
import functools
import math

import jax
import jax.numpy as jnp
from jax import lax
from jax.experimental import pallas as pl
from jax.experimental.pallas import tpu as pltpu

# ---- scaled-down BERT config (bert-base is 768/12/12/3072; too big for a demo) ----
VOCAB = 100
TYPE_VOCAB = 2
MAX_POS = 16
HIDDEN = 32
HEADS = 4
HEAD_DIM = HIDDEN // HEADS
INTERMEDIATE = 64
LAYERS = 2
CLASSES = 25            # matches nn.Linear(..., 25)
CLASSES_PAD = 128       # lane-dense padded classifier width (sliced to 25 in wrapper)
EPS = 1e-12             # BERT LayerNorm eps


# ------------------------------ fused Pallas kernel ------------------------------

def _layernorm(x, g, b):
    mean = jnp.mean(x, axis=-1, keepdims=True)
    cent = x - mean
    var = jnp.mean(cent * cent, axis=-1, keepdims=True)
    return cent * lax.rsqrt(var + EPS) * g + b


def _gelu(y):
    # TODO(synk): HF BERT uses exact erf GELU; tanh approximation differs by ~1e-3.
    c = math.sqrt(2.0 / math.pi)
    return 0.5 * y * (1.0 + jnp.tanh(c * (y + 0.044715 * y * y * y)))


def _bert_fused_kernel(
    # inputs (row-tile block for the first two, full weights for the rest)
    emb_ref, bias_ref,
    emb_ln_g_ref, emb_ln_b_ref,
    wqkv_ref, bqkv_ref, wo_ref, bo_ref,
    wi_ref, bi_ref, wf_ref, bf_ref,
    ln1_g_ref, ln1_b_ref, ln2_g_ref, ln2_b_ref,
    pool_w_ref, pool_b_ref, cls_w_ref, cls_b_ref,
    # output
    out_ref,
    *, seq_len, seqs_per_block,
):
    # loop-invariant block-diagonal additive attention bias for this row tile: (R, R)
    bias = bias_ref[...]

    # embedding LayerNorm over the whole row tile (R, H)
    x = _layernorm(emb_ref[...], emb_ln_g_ref[...], emb_ln_b_ref[...])

    # TODO(synk): for LAYERS >> 2 replace the static unroll with a grid axis (per-layer
    # weight streaming / double-buffering) to bound vreg live ranges and VMEM footprint.
    for l in range(LAYERS):                      # static unroll over layers
        # ---- self-attention: fused QKV projection over all rows of the tile ----
        # 1/sqrt(head_dim) is already folded into the Wq columns at init time.
        qkv = (jnp.dot(x, wqkv_ref[l], preferred_element_type=jnp.float32)
               + bqkv_ref[l])                                        # (R, 3H) = [q|k|v]

        ctx_heads = []
        for h in range(HEADS):                   # static unroll over heads
            q_h = qkv[:, h * HEAD_DIM:(h + 1) * HEAD_DIM]
            k_h = qkv[:, HIDDEN + h * HEAD_DIM:HIDDEN + (h + 1) * HEAD_DIM]
            v_h = qkv[:, 2 * HIDDEN + h * HEAD_DIM:2 * HIDDEN + (h + 1) * HEAD_DIM]
            # contract head_dim of both operands directly (no explicit k.T)
            s = lax.dot_general(q_h, k_h, (((1,), (1,)), ((), ())),
                                preferred_element_type=jnp.float32)  # (R, R)
            s = s + bias                         # attention mask + cross-seq block mask
            s = s - jnp.max(s, axis=-1, keepdims=True)
            p = jnp.exp(s)
            p = p * pl.reciprocal(jnp.sum(p, axis=-1, keepdims=True), approx=True)
            ctx_heads.append(jnp.dot(p, v_h, preferred_element_type=jnp.float32))
        # single lane-dense concatenation per layer (no per-head 8-lane partial stores)
        ctx = jnp.concatenate(ctx_heads, axis=-1)                    # (R, H)

        attn_out = (jnp.dot(ctx, wo_ref[l], preferred_element_type=jnp.float32)
                    + bo_ref[l])
        x = _layernorm(attn_out + x, ln1_g_ref[l], ln1_b_ref[l])

        # ---- feed-forward ----
        hmid = _gelu(
            jnp.dot(x, wi_ref[l], preferred_element_type=jnp.float32) + bi_ref[l])
        ffn_out = jnp.dot(hmid, wf_ref[l], preferred_element_type=jnp.float32) + bf_ref[l]
        x = _layernorm(ffn_out + x, ln2_g_ref[l], ln2_b_ref[l])

    # ---- pooler (dense + tanh on each sequence's [CLS] row) + classifier, fused ----
    # [CLS] rows are sliced straight out of the live value x (no staging copy).
    cls_rows = jnp.concatenate(
        [x[s * seq_len:s * seq_len + 1, :] for s in range(seqs_per_block)],
        axis=0)                                                      # (seqs_per_block, H)
    pooled = jnp.tanh(
        jnp.dot(cls_rows, pool_w_ref[...], preferred_element_type=jnp.float32)
        + pool_b_ref[...])
    # nn.Dropout(0.3): identity in eval/inference mode.
    # TODO(synk): training-mode dropout (random Bernoulli mask) not implemented.
    out_ref[...] = (
        jnp.dot(pooled, cls_w_ref[...], preferred_element_type=jnp.float32)
        + cls_b_ref[...])                                            # (seqs_per_block, CLASSES_PAD)


# ------------------------------ params & wrapper ------------------------------

def init_params(key):
    keys = jax.random.split(key, 10)

    def dense(k, shape):
        return jax.random.normal(k, shape, jnp.float32) * 0.02

    # fused QKV weights: columns are [Wq | Wk | Wv]; fold 1/sqrt(head_dim) into Wq / bq
    # at init time so the kernel does not pay a per-head scale multiply.
    scale = 1.0 / math.sqrt(HEAD_DIM)
    wqkv = dense(keys[3], (LAYERS, HIDDEN, 3 * HIDDEN))
    wqkv = wqkv.at[:, :, :HIDDEN].multiply(scale)
    bqkv = jnp.zeros((LAYERS, 1, 3 * HIDDEN), jnp.float32)
    bqkv = bqkv.at[:, :, :HIDDEN].multiply(scale)     # no-op for zero bias; kept for generality

    params = {
        "word_emb": dense(keys[0], (VOCAB, HIDDEN)),
        "pos_emb": dense(keys[1], (MAX_POS, HIDDEN)),
        "type_emb": dense(keys[2], (TYPE_VOCAB, HIDDEN)),
        "emb_ln_g": jnp.ones((1, HIDDEN), jnp.float32),
        "emb_ln_b": jnp.zeros((1, HIDDEN), jnp.float32),
        "wqkv": wqkv,
        "bqkv": bqkv,
        "wo": dense(keys[4], (LAYERS, HIDDEN, HIDDEN)),
        "bo": jnp.zeros((LAYERS, 1, HIDDEN), jnp.float32),
        "wi": dense(keys[5], (LAYERS, HIDDEN, INTERMEDIATE)),
        "bi": jnp.zeros((LAYERS, 1, INTERMEDIATE), jnp.float32),
        "wf": dense(keys[6], (LAYERS, INTERMEDIATE, HIDDEN)),
        "bf": jnp.zeros((LAYERS, 1, HIDDEN), jnp.float32),
        "ln1_g": jnp.ones((LAYERS, 1, HIDDEN), jnp.float32),
        "ln1_b": jnp.zeros((LAYERS, 1, HIDDEN), jnp.float32),
        "ln2_g": jnp.ones((LAYERS, 1, HIDDEN), jnp.float32),
        "ln2_b": jnp.zeros((LAYERS, 1, HIDDEN), jnp.float32),
        "pool_w": dense(keys[7], (HIDDEN, HIDDEN)),
        "pool_b": jnp.zeros((1, HIDDEN), jnp.float32),
    }
    # classifier padded to 128 output lanes (zero columns beyond CLASSES)
    cls_w = dense(keys[8], (HIDDEN, CLASSES))
    params["cls_w_pad"] = (
        jnp.zeros((HIDDEN, CLASSES_PAD), jnp.float32).at[:, :CLASSES].set(cls_w))
    params["cls_b_pad"] = jnp.zeros((1, CLASSES_PAD), jnp.float32)
    return params


def bert_class_forward(params, input_ids, attention_mask, token_type_ids):
    B, S = input_ids.shape

    # embedding gathers are plain-JAX glue feeding the fused kernel
    word = jnp.take(params["word_emb"], input_ids, axis=0)               # (B,S,H)
    pos = params["pos_emb"][:S][None, :, :]                              # (1,S,H)
    typ = jnp.take(params["type_emb"], token_type_ids, axis=0)           # (B,S,H)
    emb = (word + pos + typ).reshape(B * S, HIDDEN)                      # (B*S, H) row-major

    # ---- batch folding: several sequences per compute tile (fill up to 128 sublanes) ----
    max_seqs = max(1, 128 // S)
    seqs_per_block = B if B <= max_seqs else math.gcd(B, max_seqs)
    num_tiles = B // seqs_per_block
    R = seqs_per_block * S                                               # rows per grid step

    # per-tile block-diagonal additive attention bias (R, R):
    #   same-sequence key positions -> (1 - mask) * -10000 (HF semantics)
    #   cross-sequence key positions -> -1e9 (excluded; exp underflows to 0)
    key_bias = ((1.0 - attention_mask.astype(jnp.float32)) * -10000.0)   # (B, S)
    key_bias = key_bias.reshape(num_tiles, 1, R)                         # per-tile key bias
    row_seq = jnp.arange(R) // S
    same_seq = (row_seq[:, None] == row_seq[None, :]).astype(jnp.float32)  # (R, R)
    bias_tiles = same_seq[None] * key_bias + (1.0 - same_seq[None]) * (-1e9)  # (num_tiles,R,R)

    def full(shape):
        return pl.BlockSpec(shape, lambda i, _n=len(shape): (0,) * _n)

    kernel = functools.partial(
        _bert_fused_kernel, seq_len=S, seqs_per_block=seqs_per_block)

    out = pl.pallas_call(
        kernel,
        out_shape=jax.ShapeDtypeStruct((B, CLASSES_PAD), jnp.float32),
        grid=(num_tiles,),
        in_specs=[
            pl.BlockSpec((R, HIDDEN), lambda i: (i, 0)),                 # summed embeddings
            pl.BlockSpec((None, R, R), lambda i: (i, 0, 0)),             # block-diag mask bias
            full((1, HIDDEN)), full((1, HIDDEN)),                        # emb LN
            full((LAYERS, HIDDEN, 3 * HIDDEN)), full((LAYERS, 1, 3 * HIDDEN)),
            full((LAYERS, HIDDEN, HIDDEN)), full((LAYERS, 1, HIDDEN)),   # attn out proj
            full((LAYERS, HIDDEN, INTERMEDIATE)), full((LAYERS, 1, INTERMEDIATE)),
            full((LAYERS, INTERMEDIATE, HIDDEN)), full((LAYERS, 1, HIDDEN)),
            full((LAYERS, 1, HIDDEN)), full((LAYERS, 1, HIDDEN)),        # LN1
            full((LAYERS, 1, HIDDEN)), full((LAYERS, 1, HIDDEN)),        # LN2
            full((HIDDEN, HIDDEN)), full((1, HIDDEN)),                   # pooler
            full((HIDDEN, CLASSES_PAD)), full((1, CLASSES_PAD)),         # classifier (padded)
        ],
        out_specs=pl.BlockSpec((seqs_per_block, CLASSES_PAD), lambda i: (i, 0)),
        compiler_params=pltpu.CompilerParams(
            dimension_semantics=("parallel",),                           # row tiles -> 2 TCs on v7x
            vmem_limit_bytes=32 * 1024 * 1024),                          # explicit (v5e default is 16 MiB)
    )(
        emb, bias_tiles,
        params["emb_ln_g"], params["emb_ln_b"],
        params["wqkv"], params["bqkv"], params["wo"], params["bo"],
        params["wi"], params["bi"], params["wf"], params["bf"],
        params["ln1_g"], params["ln1_b"], params["ln2_g"], params["ln2_b"],
        params["pool_w"], params["pool_b"], params["cls_w_pad"], params["cls_b_pad"],
    )
    return out[:, :CLASSES]                                              # (B, 25)


if __name__ == "__main__":
    params = init_params(jax.random.PRNGKey(0))

    B, S = 2, 8
    kid, _ = jax.random.split(jax.random.PRNGKey(1))
    input_ids = jax.random.randint(kid, (B, S), 0, VOCAB, dtype=jnp.int32)
    attention_mask = jnp.ones((B, S), dtype=jnp.int32)
    token_type_ids = jnp.zeros((B, S), dtype=jnp.int32)

    fwd = jax.jit(bert_class_forward)
    logits = fwd(params, input_ids, attention_mask, token_type_ids)
    jax.block_until_ready(logits)

    assert logits.shape == (B, CLASSES) and logits.dtype == jnp.float32
    assert bool(jnp.all(jnp.isfinite(logits)))
    print("KERNEL_OK")
</pallas_src>

<mosaic_0001>
module attributes {stable_mosaic.version = 11 : i64} {
  func.func @_bert_fused_kernel(%arg0: i32, %arg1: memref<16x32xf32, #tpu.memory_space<vmem>>, %arg2: memref<1x16x16xf32, #tpu.memory_space<vmem>>, %arg3: memref<1x32xf32, #tpu.memory_space<vmem>>, %arg4: memref<1x32xf32, #tpu.memory_space<vmem>>, %arg5: memref<2x32x96xf32, #tpu.memory_space<vmem>>, %arg6: memref<2x1x96xf32, #tpu.memory_space<vmem>>, %arg7: memref<2x32x32xf32, #tpu.memory_space<vmem>>, %arg8: memref<2x1x32xf32, #tpu.memory_space<vmem>>, %arg9: memref<2x32x64xf32, #tpu.memory_space<vmem>>, %arg10: memref<2x1x64xf32, #tpu.memory_space<vmem>>, %arg11: memref<2x64x32xf32, #tpu.memory_space<vmem>>, %arg12: memref<2x1x32xf32, #tpu.memory_space<vmem>>, %arg13: memref<2x1x32xf32, #tpu.memory_space<vmem>>, %arg14: memref<2x1x32xf32, #tpu.memory_space<vmem>>, %arg15: memref<2x1x32xf32, #tpu.memory_space<vmem>>, %arg16: memref<2x1x32xf32, #tpu.memory_space<vmem>>, %arg17: memref<32x32xf32, #tpu.memory_space<vmem>>, %arg18: memref<1x32xf32, #tpu.memory_space<vmem>>, %arg19: memref<32x128xf32, #tpu.memory_space<vmem>>, %arg20: memref<1x128xf32, #tpu.memory_space<vmem>>, %arg21: memref<2x128xf32, #tpu.memory_space<vmem>>) attributes {dimension_semantics = [#tpu.dimension_semantics<parallel>], iteration_bounds = array<i64: 1>, scalar_prefetch = 0 : i64, scratch_operands = 0 : i64, tpu.core_type = #tpu.core_type<tc>, window_params = [{transform_indices = @transform_0, window_bounds = array<i64: 16, 32>}, {transform_indices = @transform_1, window_bounds = array<i64: 1, 16, 16>}, {pipeline_mode = #tpu.pipeline_mode<synchronous>, transform_indices = @transform_2, window_bounds = array<i64: 1, 32>}, {pipeline_mode = #tpu.pipeline_mode<synchronous>, transform_indices = @transform_3, window_bounds = array<i64: 1, 32>}, {pipeline_mode = #tpu.pipeline_mode<synchronous>, transform_indices = @transform_4, window_bounds = array<i64: 2, 32, 96>}, {pipeline_mode = #tpu.pipeline_mode<synchronous>, transform_indices = @transform_5, window_bounds = array<i64: 2, 1, 96>}, {pipeline_mode = #tpu.pipeline_mode<synchronous>, transform_indices = @transform_6, window_bounds = array<i64: 2, 32, 32>}, {pipeline_mode = #tpu.pipeline_mode<synchronous>, transform_indices = @transform_7, window_bounds = array<i64: 2, 1, 32>}, {pipeline_mode = #tpu.pipeline_mode<synchronous>, transform_indices = @transform_8, window_bounds = array<i64: 2, 32, 64>}, {pipeline_mode = #tpu.pipeline_mode<synchronous>, transform_indices = @transform_9, window_bounds = array<i64: 2, 1, 64>}, {pipeline_mode = #tpu.pipeline_mode<synchronous>, transform_indices = @transform_10, window_bounds = array<i64: 2, 64, 32>}, {pipeline_mode = #tpu.pipeline_mode<synchronous>, transform_indices = @transform_11, window_bounds = array<i64: 2, 1, 32>}, {pipeline_mode = #tpu.pipeline_mode<synchronous>, transform_indices = @transform_12, window_bounds = array<i64: 2, 1, 32>}, {pipeline_mode = #tpu.pipeline_mode<synchronous>, transform_indices = @transform_13, window_bounds = array<i64: 2, 1, 32>}, {pipeline_mode = #tpu.pipeline_mode<synchronous>, transform_indices = @transform_14, window_bounds = array<i64: 2, 1, 32>}, {pipeline_mode = #tpu.pipeline_mode<synchronous>, transform_indices = @transform_15, window_bounds = array<i64: 2, 1, 32>}, {pipeline_mode = #tpu.pipeline_mode<synchronous>, transform_indices = @transform_16, window_bounds = array<i64: 32, 32>}, {pipeline_mode = #tpu.pipeline_mode<synchronous>, transform_indices = @transform_17, window_bounds = array<i64: 1, 32>}, {pipeline_mode = #tpu.pipeline_mode<synchronous>, transform_indices = @transform_18, window_bounds = array<i64: 32, 128>}, {pipeline_mode = #tpu.pipeline_mode<synchronous>, transform_indices = @transform_19, window_bounds = array<i64: 1, 128>}, {transform_indices = @transform_20, window_bounds = array<i64: 2, 128>}]} {
    %c0 = arith.constant 0 : index
    %c0_0 = arith.constant 0 : index
    %c0_1 = arith.constant 0 : index
    %0 = vector.load %arg2[%c0, %c0_0, %c0_1] : memref<1x16x16xf32, #tpu.memory_space<vmem>>, vector<1x16x16xf32>
    %1 = vector.shape_cast %0 : vector<1x16x16xf32> to vector<16x16xf32>
    %c0_2 = arith.constant 0 : index
    %c0_3 = arith.constant 0 : index
    %2 = vector.load %arg1[%c0_2, %c0_3] : memref<16x32xf32, #tpu.memory_space<vmem>>, vector<16x32xf32>
    %c0_4 = arith.constant 0 : index
    %c0_5 = arith.constant 0 : index
    %3 = vector.load %arg3[%c0_4, %c0_5] : memref<1x32xf32, #tpu.memory_space<vmem>>, vector<1x32xf32>
    %c0_6 = arith.constant 0 : index
    %c0_7 = arith.constant 0 : index
    %4 = vector.load %arg4[%c0_6, %c0_7] : memref<1x32xf32, #tpu.memory_space<vmem>>, vector<1x32xf32>
    %cst = arith.constant dense<0.000000e+00> : vector<16xf32>
    %5 = vector.multi_reduction <add>, %2, %cst [1] : vector<16x32xf32> to vector<16xf32>
    %6 = vector.shape_cast %5 : vector<16xf32> to vector<16x1xf32>
    %cst_8 = arith.constant 3.200000e+01 : f32
    %7 = vector.broadcast %cst_8 : f32 to vector<16x1xf32>
    %8 = arith.divf %6, %7 : vector<16x1xf32>
    %9 = vector.broadcast %8 : vector<16x1xf32> to vector<16x32xf32>
    %10 = arith.subf %2, %9 : vector<16x32xf32>
    %11 = arith.mulf %10, %10 : vector<16x32xf32>
    %cst_9 = arith.constant dense<0.000000e+00> : vector<16xf32>
    %12 = vector.multi_reduction <add>, %11, %cst_9 [1] : vector<16x32xf32> to vector<16xf32>
    %13 = vector.shape_cast %12 : vector<16xf32> to vector<16x1xf32>
    %cst_10 = arith.constant 3.200000e+01 : f32
    %14 = vector.broadcast %cst_10 : f32 to vector<16x1xf32>
    %15 = arith.divf %13, %14 : vector<16x1xf32>
    %cst_11 = arith.constant 9.99999996E-13 : f32
    %16 = vector.broadcast %cst_11 : f32 to vector<16x1xf32>
    %17 = arith.addf %15, %16 : vector<16x1xf32>
    %18 = math.rsqrt %17 : vector<16x1xf32>
    %19 = vector.broadcast %18 : vector<16x1xf32> to vector<16x32xf32>
    %20 = arith.mulf %10, %19 : vector<16x32xf32>
    %21 = vector.broadcast %3 : vector<1x32xf32> to vector<16x32xf32>
    %22 = arith.mulf %20, %21 : vector<16x32xf32>
    %23 = vector.broadcast %4 : vector<1x32xf32> to vector<16x32xf32>
    %24 = arith.addf %22, %23 : vector<16x32xf32>
    %c0_12 = arith.constant 0 : index
    %c0_13 = arith.constant 0 : index
    %c0_14 = arith.constant 0 : index
    %25 = vector.load %arg5[%c0_12, %c0_13, %c0_14] : memref<2x32x96xf32, #tpu.memory_space<vmem>>, vector<1x32x96xf32>
    %26 = vector.shape_cast %25 : vector<1x32x96xf32> to vector<32x96xf32>
    %cst_15 = arith.constant dense<0.000000e+00> : vector<16x96xf32>
    %27 = tpu.matmul %24, %26, %cst_15 {dimension_numbers = #tpu.dot_dimension_numbers<[1], [0], [0], [1], [0, 0, 1, 1], [], []>} : vector<16x32xf32>, vector<32x96xf32>, vector<16x96xf32> -> vector<16x96xf32>
    %c0_16 = arith.constant 0 : index
    %c0_17 = arith.constant 0 : index
    %c0_18 = arith.constant 0 : index
    %28 = vector.load %arg6[%c0_16, %c0_17, %c0_18] : memref<2x1x96xf32, #tpu.memory_space<vmem>>, vector<1x1x96xf32>
    %29 = vector.shape_cast %28 : vector<1x1x96xf32> to vector<1x96xf32>
    %30 = vector.broadcast %29 : vector<1x96xf32> to vector<16x96xf32>
    %31 = arith.addf %27, %30 : vector<16x96xf32>
    %32 = vector.extract_strided_slice %31 {offsets = [0, 0], sizes = [16, 8], strides = [1, 1]} : vector<16x96xf32> to vector<16x8xf32>
    %33 = vector.extract_strided_slice %31 {offsets = [0, 32], sizes = [16, 8], strides = [1, 1]} : vector<16x96xf32> to vector<16x8xf32>
    %34 = vector.extract_strided_slice %31 {offsets = [0, 64], sizes = [16, 8], strides = [1, 1]} : vector<16x96xf32> to vector<16x8xf32>
    %cst_19 = arith.constant dense<0.000000e+00> : vector<16x16xf32>
    %35 = tpu.matmul %32, %33, %cst_19 {dimension_numbers = #tpu.dot_dimension_numbers<[1], [1], [0], [0], [0, 0, 1, 0], [], []>} : vector<16x8xf32>, vector<16x8xf32>, vector<16x16xf32> -> vector<16x16xf32>
    %36 = arith.addf %35, %1 : vector<16x16xf32>
    %cst_20 = arith.constant dense<0xFF800000> : vector<16xf32>
    %37 = vector.multi_reduction <maximumf>, %36, %cst_20 [1] : vector<16x16xf32> to vector<16xf32>
    %38 = vector.shape_cast %37 : vector<16xf32> to vector<16x1xf32>
    %39 = vector.broadcast %38 : vector<16x1xf32> to vector<16x16xf32>
    %40 = arith.subf %36, %39 : vector<16x16xf32>
    %41 = math.exp %40 : vector<16x16xf32>
    %cst_21 = arith.constant dense<0.000000e+00> : vector<16xf32>
    %42 = vector.multi_reduction <add>, %41, %cst_21 [1] : vector<16x16xf32> to vector<16xf32>
    %43 = vector.shape_cast %42 : vector<16xf32> to vector<16x1xf32>
    %44 = tpu.reciprocal %43 {approx = true} : vector<16x1xf32> -> vector<16x1xf32>
    %45 = vector.broadcast %44 : vector<16x1xf32> to vector<16x16xf32>
    %46 = arith.mulf %41, %45 : vector<16x16xf32>
    %cst_22 = arith.constant dense<0.000000e+00> : vector<16x8xf32>
    %47 = tpu.matmul %46, %34, %cst_22 {dimension_numbers = #tpu.dot_dimension_numbers<[1], [0], [0], [1], [0, 0, 1, 1], [], []>} : vector<16x16xf32>, vector<16x8xf32>, vector<16x8xf32> -> vector<16x8xf32>
    %48 = vector.extract_strided_slice %31 {offsets = [0, 8], sizes = [16, 8], strides = [1, 1]} : vector<16x96xf32> to vector<16x8xf32>
    %49 = vector.extract_strided_slice %31 {offsets = [0, 40], sizes = [16, 8], strides = [1, 1]} : vector<16x96xf32> to vector<16x8xf32>
    %50 = vector.extract_strided_slice %31 {offsets = [0, 72], sizes = [16, 8], strides = [1, 1]} : vector<16x96xf32> to vector<16x8xf32>
    %cst_23 = arith.constant dense<0.000000e+00> : vector<16x16xf32>
    %51 = tpu.matmul %48, %49, %cst_23 {dimension_numbers = #tpu.dot_dimension_numbers<[1], [1], [0], [0], [0, 0, 1, 0], [], []>} : vector<16x8xf32>, vector<16x8xf32>, vector<16x16xf32> -> vector<16x16xf32>
    %52 = arith.addf %51, %1 : vector<16x16xf32>
    %cst_24 = arith.constant dense<0xFF800000> : vector<16xf32>
    %53 = vector.multi_reduction <maximumf>, %52, %cst_24 [1] : vector<16x16xf32> to vector<16xf32>
    %54 = vector.shape_cast %53 : vector<16xf32> to vector<16x1xf32>
    %55 = vector.broadcast %54 : vector<16x1xf32> to vector<16x16xf32>
    %56 = arith.subf %52, %55 : vector<16x16xf32>
    %57 = math.exp %56 : vector<16x16xf32>
    %cst_25 = arith.constant dense<0.000000e+00> : vector<16xf32>
    %58 = vector.multi_reduction <add>, %57, %cst_25 [1] : vector<16x16xf32> to vector<16xf32>
    %59 = vector.shape_cast %58 : vector<16xf32> to vector<16x1xf32>
    %60 = tpu.reciprocal %59 {approx = true} : vector<16x1xf32> -> vector<16x1xf32>
    %61 = vector.broadcast %60 : vector<16x1xf32> to vector<16x16xf32>
    %62 = arith.mulf %57, %61 : vector<16x16xf32>
    %cst_26 = arith.constant dense<0.000000e+00> : vector<16x8xf32>
    %63 = tpu.matmul %62, %50, %cst_26 {dimension_numbers = #tpu.dot_dimension_numbers<[1], [0], [0], [1], [0, 0, 1, 1], [], []>} : vector<16x16xf32>, vector<16x8xf32>, vector<16x8xf32> -> vector<16x8xf32>
    %64 = vector.extract_strided_slice %31 {offsets = [0, 16], sizes = [16, 8], strides = [1, 1]} : vector<16x96xf32> to vector<16x8xf32>
    %65 = vector.extract_strided_slice %31 {offsets = [0, 48], sizes = [16, 8], strides = [1, 1]} : vector<16x96xf32> to vector<16x8xf32>
    %66 = vector.extract_strided_slice %31 {offsets = [0, 80], sizes = [16, 8], strides = [1, 1]} : vector<16x96xf32> to vector<16x8xf32>
    %cst_27 = arith.constant dense<0.000000e+00> : vector<16x16xf32>
    %67 = tpu.matmul %64, %65, %cst_27 {dimension_numbers = #tpu.dot_dimension_numbers<[1], [1], [0], [0], [0, 0, 1, 0], [], []>} : vector<16x8xf32>, vector<16x8xf32>, vector<16x16xf32> -> vector<16x16xf32>
    %68 = arith.addf %67, %1 : vector<16x16xf32>
    %cst_28 = arith.constant dense<0xFF800000> : vector<16xf32>
    %69 = vector.multi_reduction <maximumf>, %68, %cst_28 [1] : vector<16x16xf32> to vector<16xf32>
    %70 = vector.shape_cast %69 : vector<16xf32> to vector<16x1xf32>
    %71 = vector.broadcast %70 : vector<16x1xf32> to vector<16x16xf32>
    %72 = arith.subf %68, %71 : vector<16x16xf32>
    %73 = math.exp %72 : vector<16x16xf32>
    %cst_29 = arith.constant dense<0.000000e+00> : vector<16xf32>
    %74 = vector.multi_reduction <add>, %73, %cst_29 [1] : vector<16x16xf32> to vector<16xf32>
    %75 = vector.shape_cast %74 : vector<16xf32> to vector<16x1xf32>
    %76 = tpu.reciprocal %75 {approx = true} : vector<16x1xf32> -> vector<16x1xf32>
    %77 = vector.broadcast %76 : vector<16x1xf32> to vector<16x16xf32>
    %78 = arith.mulf %73, %77 : vector<16x16xf32>
    %cst_30 = arith.constant dense<0.000000e+00> : vector<16x8xf32>
    %79 = tpu.matmul %78, %66, %cst_30 {dimension_numbers = #tpu.dot_dimension_numbers<[1], [0], [0], [1], [0, 0, 1, 1], [], []>} : vector<16x16xf32>, vector<16x8xf32>, vector<16x8xf32> -> vector<16x8xf32>
    %80 = vector.extract_strided_slice %31 {offsets = [0, 24], sizes = [16, 8], strides = [1, 1]} : vector<16x96xf32> to vector<16x8xf32>
    %81 = vector.extract_strided_slice %31 {offsets = [0, 56], sizes = [16, 8], strides = [1, 1]} : vector<16x96xf32> to vector<16x8xf32>
    %82 = vector.extract_strided_slice %31 {offsets = [0, 88], sizes = [16, 8], strides = [1, 1]} : vector<16x96xf32> to vector<16x8xf32>
    %cst_31 = arith.constant dense<0.000000e+00> : vector<16x16xf32>
    %83 = tpu.matmul %80, %81, %cst_31 {dimension_numbers = #tpu.dot_dimension_numbers<[1], [1], [0], [0], [0, 0, 1, 0], [], []>} : vector<16x8xf32>, vector<16x8xf32>, vector<16x16xf32> -> vector<16x16xf32>
    %84 = arith.addf %83, %1 : vector<16x16xf32>
    %cst_32 = arith.constant dense<0xFF800000> : vector<16xf32>
    %85 = vector.multi_reduction <maximumf>, %84, %cst_32 [1] : vector<16x16xf32> to vector<16xf32>
    %86 = vector.shape_cast %85 : vector<16xf32> to vector<16x1xf32>
    %87 = vector.broadcast %86 : vector<16x1xf32> to vector<16x16xf32>
    %88 = arith.subf %84, %87 : vector<16x16xf32>
    %89 = math.exp %88 : vector<16x16xf32>
    %cst_33 = arith.constant dense<0.000000e+00> : vector<16xf32>
    %90 = vector.multi_reduction <add>, %89, %cst_33 [1] : vector<16x16xf32> to vector<16xf32>
    %91 = vector.shape_cast %90 : vector<16xf32> to vector<16x1xf32>
    %92 = tpu.reciprocal %91 {approx = true} : vector<16x1xf32> -> vector<16x1xf32>
    %93 = vector.broadcast %92 : vector<16x1xf32> to vector<16x16xf32>
    %94 = arith.mulf %89, %93 : vector<16x16xf32>
    %cst_34 = arith.constant dense<0.000000e+00> : vector<16x8xf32>
    %95 = tpu.matmul %94, %82, %cst_34 {dimension_numbers = #tpu.dot_dimension_numbers<[1], [0], [0], [1], [0, 0, 1, 1], [], []>} : vector<16x16xf32>, vector<16x8xf32>, vector<16x8xf32> -> vector<16x8xf32>
    %96 = tpu.concatenate %47, %63, %79, %95 in 1 : vector<16x8xf32>, vector<16x8xf32>, vector<16x8xf32>, vector<16x8xf32> -> vector<16x32xf32>
    %c0_35 = arith.constant 0 : index
    %c0_36 = arith.constant 0 : index
    %c0_37 = arith.constant 0 : index
    %97 = vector.load %arg7[%c0_35, %c0_36, %c0_37] : memref<2x32x32xf32, #tpu.memory_space<vmem>>, vector<1x32x32xf32>
    %98 = vector.shape_cast %97 : vector<1x32x32xf32> to vector<32x32xf32>
    %cst_38 = arith.constant dense<0.000000e+00> : vector<16x32xf32>
    %99 = tpu.matmul %96, %98, %cst_38 {dimension_numbers = #tpu.dot_dimension_numbers<[1], [0], [0], [1], [0, 0, 1, 1], [], []>} : vector<16x32xf32>, vector<32x32xf32>, vector<16x32xf32> -> vector<16x32xf32>
    %c0_39 = arith.constant 0 : index
    %c0_40 = arith.constant 0 : index
    %c0_41 = arith.constant 0 : index
    %100 = vector.load %arg8[%c0_39, %c0_40, %c0_41] : memref<2x1x32xf32, #tpu.memory_space<vmem>>, vector<1x1x32xf32>
    %101 = vector.shape_cast %100 : vector<1x1x32xf32> to vector<1x32xf32>
    %102 = vector.broadcast %101 : vector<1x32xf32> to vector<16x32xf32>
    %103 = arith.addf %99, %102 : vector<16x32xf32>
    %104 = arith.addf %103, %24 : vector<16x32xf32>
    %c0_42 = arith.constant 0 : index
    %c0_43 = arith.constant 0 : index
    %c0_44 = arith.constant 0 : index
    %105 = vector.load %arg13[%c0_42, %c0_43, %c0_44] : memref<2x1x32xf32, #tpu.memory_space<vmem>>, vector<1x1x32xf32>
    %106 = vector.shape_cast %105 : vector<1x1x32xf32> to vector<1x32xf32>
    %c0_45 = arith.constant 0 : index
    %c0_46 = arith.constant 0 : index
    %c0_47 = arith.constant 0 : index
    %107 = vector.load %arg14[%c0_45, %c0_46, %c0_47] : memref<2x1x32xf32, #tpu.memory_space<vmem>>, vector<1x1x32xf32>
    %108 = vector.shape_cast %107 : vector<1x1x32xf32> to vector<1x32xf32>
    %cst_48 = arith.constant dense<0.000000e+00> : vector<16xf32>
    %109 = vector.multi_reduction <add>, %104, %cst_48 [1] : vector<16x32xf32> to vector<16xf32>
    %110 = vector.shape_cast %109 : vector<16xf32> to vector<16x1xf32>
    %cst_49 = arith.constant 3.200000e+01 : f32
    %111 = vector.broadcast %cst_49 : f32 to vector<16x1xf32>
    %112 = arith.divf %110, %111 : vector<16x1xf32>
    %113 = vector.broadcast %112 : vector<16x1xf32> to vector<16x32xf32>
    %114 = arith.subf %104, %113 : vector<16x32xf32>
    %115 = arith.mulf %114, %114 : vector<16x32xf32>
    %cst_50 = arith.constant dense<0.000000e+00> : vector<16xf32>
    %116 = vector.multi_reduction <add>, %115, %cst_50 [1] : vector<16x32xf32> to vector<16xf32>
    %117 = vector.shape_cast %116 : vector<16xf32> to vector<16x1xf32>
    %cst_51 = arith.constant 3.200000e+01 : f32
    %118 = vector.broadcast %cst_51 : f32 to vector<16x1xf32>
    %119 = arith.divf %117, %118 : vector<16x1xf32>
    %cst_52 = arith.constant 9.99999996E-13 : f32
    %120 = vector.broadcast %cst_52 : f32 to vector<16x1xf32>
    %121 = arith.addf %119, %120 : vector<16x1xf32>
    %122 = math.rsqrt %121 : vector<16x1xf32>
    %123 = vector.broadcast %122 : vector<16x1xf32> to vector<16x32xf32>
    %124 = arith.mulf %114, %123 : vector<16x32xf32>
    %125 = vector.broadcast %106 : vector<1x32xf32> to vector<16x32xf32>
    %126 = arith.mulf %124, %125 : vector<16x32xf32>
    %127 = vector.broadcast %108 : vector<1x32xf32> to vector<16x32xf32>
    %128 = arith.addf %126, %127 : vector<16x32xf32>
    %c0_53 = arith.constant 0 : index
    %c0_54 = arith.constant 0 : index
    %c0_55 = arith.constant 0 : index
    %129 = vector.load %arg9[%c0_53, %c0_54, %c0_55] : memref<2x32x64xf32, #tpu.memory_space<vmem>>, vector<1x32x64xf32>
    %130 = vector.shape_cast %129 : vector<1x32x64xf32> to vector<32x64xf32>
    %cst_56 = arith.constant dense<0.000000e+00> : vector<16x64xf32>
    %131 = tpu.matmul %128, %130, %cst_56 {dimension_numbers = #tpu.dot_dimension_numbers<[1], [0], [0], [1], [0, 0, 1, 1], [], []>} : vector<16x32xf32>, vector<32x64xf32>, vector<16x64xf32> -> vector<16x64xf32>
    %c0_57 = arith.constant 0 : index
    %c0_58 = arith.constant 0 : index
    %c0_59 = arith.constant 0 : index
    %132 = vector.load %arg10[%c0_57, %c0_58, %c0_59] : memref<2x1x64xf32, #tpu.memory_space<vmem>>, vector<1x1x64xf32>
    %133 = vector.shape_cast %132 : vector<1x1x64xf32> to vector<1x64xf32>
    %134 = vector.broadcast %133 : vector<1x64xf32> to vector<16x64xf32>
    %135 = arith.addf %131, %134 : vector<16x64xf32>
    %cst_60 = arith.constant 5.000000e-01 : f32
    %136 = vector.broadcast %cst_60 : f32 to vector<16x64xf32>
    %137 = arith.mulf %136, %135 : vector<16x64xf32>
    %cst_61 = arith.constant 4.471500e-02 : f32
    %138 = vector.broadcast %cst_61 : f32 to vector<16x64xf32>
    %139 = arith.mulf %138, %135 : vector<16x64xf32>
    %140 = arith.mulf %139, %135 : vector<16x64xf32>
    %141 = arith.mulf %140, %135 : vector<16x64xf32>
    %142 = arith.addf %135, %141 : vector<16x64xf32>
    %cst_62 = arith.constant 0.797884583 : f32
    %143 = vector.broadcast %cst_62 : f32 to vector<16x64xf32>
    %144 = arith.mulf %143, %142 : vector<16x64xf32>
    %145 = math.tanh %144 : vector<16x64xf32>
    %cst_63 = arith.constant 1.000000e+00 : f32
    %146 = vector.broadcast %cst_63 : f32 to vector<16x64xf32>
    %147 = arith.addf %146, %145 : vector<16x64xf32>
    %148 = arith.mulf %137, %147 : vector<16x64xf32>
    %c0_64 = arith.constant 0 : index
    %c0_65 = arith.constant 0 : index
    %c0_66 = arith.constant 0 : index
    %149 = vector.load %arg11[%c0_64, %c0_65, %c0_66] : memref<2x64x32xf32, #tpu.memory_space<vmem>>, vector<1x64x32xf32>
    %150 = vector.shape_cast %149 : vector<1x64x32xf32> to vector<64x32xf32>
    %cst_67 = arith.constant dense<0.000000e+00> : vector<16x32xf32>
    %151 = tpu.matmul %148, %150, %cst_67 {dimension_numbers = #tpu.dot_dimension_numbers<[1], [0], [0], [1], [0, 0, 1, 1], [], []>} : vector<16x64xf32>, vector<64x32xf32>, vector<16x32xf32> -> vector<16x32xf32>
    %c0_68 = arith.constant 0 : index
    %c0_69 = arith.constant 0 : index
    %c0_70 = arith.constant 0 : index
    %152 = vector.load %arg12[%c0_68, %c0_69, %c0_70] : memref<2x1x32xf32, #tpu.memory_space<vmem>>, vector<1x1x32xf32>
    %153 = vector.shape_cast %152 : vector<1x1x32xf32> to vector<1x32xf32>
    %154 = vector.broadcast %153 : vector<1x32xf32> to vector<16x32xf32>
    %155 = arith.addf %151, %154 : vector<16x32xf32>
    %156 = arith.addf %155, %128 : vector<16x32xf32>
    %c0_71 = arith.constant 0 : index
    %c0_72 = arith.constant 0 : index
    %c0_73 = arith.constant 0 : index
    %157 = vector.load %arg15[%c0_71, %c0_72, %c0_73] : memref<2x1x32xf32, #tpu.memory_space<vmem>>, vector<1x1x32xf32>
    %158 = vector.shape_cast %157 : vector<1x1x32xf32> to vector<1x32xf32>
    %c0_74 = arith.constant 0 : index
    %c0_75 = arith.constant 0 : index
    %c0_76 = arith.constant 0 : index
    %159 = vector.load %arg16[%c0_74, %c0_75, %c0_76] : memref<2x1x32xf32, #tpu.memory_space<vmem>>, vector<1x1x32xf32>
    %160 = vector.shape_cast %159 : vector<1x1x32xf32> to vector<1x32xf32>
    %cst_77 = arith.constant dense<0.000000e+00> : vector<16xf32>
    %161 = vector.multi_reduction <add>, %156, %cst_77 [1] : vector<16x32xf32> to vector<16xf32>
    %162 = vector.shape_cast %161 : vector<16xf32> to vector<16x1xf32>
    %cst_78 = arith.constant 3.200000e+01 : f32
    %163 = vector.broadcast %cst_78 : f32 to vector<16x1xf32>
    %164 = arith.divf %162, %163 : vector<16x1xf32>
    %165 = vector.broadcast %164 : vector<16x1xf32> to vector<16x32xf32>
    %166 = arith.subf %156, %165 : vector<16x32xf32>
    %167 = arith.mulf %166, %166 : vector<16x32xf32>
    %cst_79 = arith.constant dense<0.000000e+00> : vector<16xf32>
    %168 = vector.multi_reduction <add>, %167, %cst_79 [1] : vector<16x32xf32> to vector<16xf32>
    %169 = vector.shape_cast %168 : vector<16xf32> to vector<16x1xf32>
    %cst_80 = arith.constant 3.200000e+01 : f32
    %170 = vector.broadcast %cst_80 : f32 to vector<16x1xf32>
    %171 = arith.divf %169, %170 : vector<16x1xf32>
    %cst_81 = arith.constant 9.99999996E-13 : f32
    %172 = vector.broadcast %cst_81 : f32 to vector<16x1xf32>
    %173 = arith.addf %171, %172 : vector<16x1xf32>
    %174 = math.rsqrt %173 : vector<16x1xf32>
    %175 = vector.broadcast %174 : vector<16x1xf32> to vector<16x32xf32>
    %176 = arith.mulf %166, %175 : vector<16x32xf32>
    %177 = vector.broadcast %158 : vector<1x32xf32> to vector<16x32xf32>
    %178 = arith.mulf %176, %177 : vector<16x32xf32>
    %179 = vector.broadcast %160 : vector<1x32xf32> to vector<16x32xf32>
    %180 = arith.addf %178, %179 : vector<16x32xf32>
    %c1 = arith.constant 1 : index
    %c0_82 = arith.constant 0 : index
    %c0_83 = arith.constant 0 : index
    %181 = vector.load %arg5[%c1, %c0_82, %c0_83] : memref<2x32x96xf32, #tpu.memory_space<vmem>>, vector<1x32x96xf32>
    %182 = vector.shape_cast %181 : vector<1x32x96xf32> to vector<32x96xf32>
    %cst_84 = arith.constant dense<0.000000e+00> : vector<16x96xf32>
    %183 = tpu.matmul %180, %182, %cst_84 {dimension_numbers = #tpu.dot_dimension_numbers<[1], [0], [0], [1], [0, 0, 1, 1], [], []>} : vector<16x32xf32>, vector<32x96xf32>, vector<16x96xf32> -> vector<16x96xf32>
    %c1_85 = arith.constant 1 : index
    %c0_86 = arith.constant 0 : index
    %c0_87 = arith.constant 0 : index
    %184 = vector.load %arg6[%c1_85, %c0_86, %c0_87] : memref<2x1x96xf32, #tpu.memory_space<vmem>>, vector<1x1x96xf32>
    %185 = vector.shape_cast %184 : vector<1x1x96xf32> to vector<1x96xf32>
    %186 = vector.broadcast %185 : vector<1x96xf32> to vector<16x96xf32>
    %187 = arith.addf %183, %186 : vector<16x96xf32>
    %188 = vector.extract_strided_slice %187 {offsets = [0, 0], sizes = [16, 8], strides = [1, 1]} : vector<16x96xf32> to vector<16x8xf32>
    %189 = vector.extract_strided_slice %187 {offsets = [0, 32], sizes = [16, 8], strides = [1, 1]} : vector<16x96xf32> to vector<16x8xf32>
    %190 = vector.extract_strided_slice %187 {offsets = [0, 64], sizes = [16, 8], strides = [1, 1]} : vector<16x96xf32> to vector<16x8xf32>
    %cst_88 = arith.constant dense<0.000000e+00> : vector<16x16xf32>
    %191 = tpu.matmul %188, %189, %cst_88 {dimension_numbers = #tpu.dot_dimension_numbers<[1], [1], [0], [0], [0, 0, 1, 0], [], []>} : vector<16x8xf32>, vector<16x8xf32>, vector<16x16xf32> -> vector<16x16xf32>
    %192 = arith.addf %191, %1 : vector<16x16xf32>
    %cst_89 = arith.constant dense<0xFF800000> : vector<16xf32>
    %193 = vector.multi_reduction <maximumf>, %192, %cst_89 [1] : vector<16x16xf32> to vector<16xf32>
    %194 = vector.shape_cast %193 : vector<16xf32> to vector<16x1xf32>
    %195 = vector.broadcast %194 : vector<16x1xf32> to vector<16x16xf32>
    %196 = arith.subf %192, %195 : vector<16x16xf32>
    %197 = math.exp %196 : vector<16x16xf32>
    %cst_90 = arith.constant dense<0.000000e+00> : vector<16xf32>
    %198 = vector.multi_reduction <add>, %197, %cst_90 [1] : vector<16x16xf32> to vector<16xf32>
    %199 = vector.shape_cast %198 : vector<16xf32> to vector<16x1xf32>
    %200 = tpu.reciprocal %199 {approx = true} : vector<16x1xf32> -> vector<16x1xf32>
    %201 = vector.broadcast %200 : vector<16x1xf32> to vector<16x16xf32>
    %202 = arith.mulf %197, %201 : vector<16x16xf32>
    %cst_91 = arith.constant dense<0.000000e+00> : vector<16x8xf32>
    %203 = tpu.matmul %202, %190, %cst_91 {dimension_numbers = #tpu.dot_dimension_numbers<[1], [0], [0], [1], [0, 0, 1, 1], [], []>} : vector<16x16xf32>, vector<16x8xf32>, vector<16x8xf32> -> vector<16x8xf32>
    %204 = vector.extract_strided_slice %187 {offsets = [0, 8], sizes = [16, 8], strides = [1, 1]} : vector<16x96xf32> to vector<16x8xf32>
    %205 = vector.extract_strided_slice %187 {offsets = [0, 40], sizes = [16, 8], strides = [1, 1]} : vector<16x96xf32> to vector<16x8xf32>
    %206 = vector.extract_strided_slice %187 {offsets = [0, 72], sizes = [16, 8], strides = [1, 1]} : vector<16x96xf32> to vector<16x8xf32>
    %cst_92 = arith.constant dense<0.000000e+00> : vector<16x16xf32>
    %207 = tpu.matmul %204, %205, %cst_92 {dimension_numbers = #tpu.dot_dimension_numbers<[1], [1], [0], [0], [0, 0, 1, 0], [], []>} : vector<16x8xf32>, vector<16x8xf32>, vector<16x16xf32> -> vector<16x16xf32>
    %208 = arith.addf %207, %1 : vector<16x16xf32>
    %cst_93 = arith.constant dense<0xFF800000> : vector<16xf32>
    %209 = vector.multi_reduction <maximumf>, %208, %cst_93 [1] : vector<16x16xf32> to vector<16xf32>
    %210 = vector.shape_cast %209 : vector<16xf32> to vector<16x1xf32>
    %211 = vector.broadcast %210 : vector<16x1xf32> to vector<16x16xf32>
    %212 = arith.subf %208, %211 : vector<16x16xf32>
    %213 = math.exp %212 : vector<16x16xf32>
    %cst_94 = arith.constant dense<0.000000e+00> : vector<16xf32>
    %214 = vector.multi_reduction <add>, %213, %cst_94 [1] : vector<16x16xf32> to vector<16xf32>
    %215 = vector.shape_cast %214 : vector<16xf32> to vector<16x1xf32>
    %216 = tpu.reciprocal %215 {approx = true} : vector<16x1xf32> -> vector<16x1xf32>
    %217 = vector.broadcast %216 : vector<16x1xf32> to vector<16x16xf32>
    %218 = arith.mulf %213, %217 : vector<16x16xf32>
    %cst_95 = arith.constant dense<0.000000e+00> : vector<16x8xf32>
    %219 = tpu.matmul %218, %206, %cst_95 {dimension_numbers = #tpu.dot_dimension_numbers<[1], [0], [0], [1], [0, 0, 1, 1], [], []>} : vector<16x16xf32>, vector<16x8xf32>, vector<16x8xf32> -> vector<16x8xf32>
    %220 = vector.extract_strided_slice %187 {offsets = [0, 16], sizes = [16, 8], strides = [1, 1]} : vector<16x96xf32> to vector<16x8xf32>
    %221 = vector.extract_strided_slice %187 {offsets = [0, 48], sizes = [16, 8], strides = [1, 1]} : vector<16x96xf32> to vector<16x8xf32>
    %222 = vector.extract_strided_slice %187 {offsets = [0, 80], sizes = [16, 8], strides = [1, 1]} : vector<16x96xf32> to vector<16x8xf32>
    %cst_96 = arith.constant dense<0.000000e+00> : vector<16x16xf32>
    %223 = tpu.matmul %220, %221, %cst_96 {dimension_numbers = #tpu.dot_dimension_numbers<[1], [1], [0], [0], [0, 0, 1, 0], [], []>} : vector<16x8xf32>, vector<16x8xf32>, vector<16x16xf32> -> vector<16x16xf32>
    %224 = arith.addf %223, %1 : vector<16x16xf32>
    %cst_97 = arith.constant dense<0xFF800000> : vector<16xf32>
    %225 = vector.multi_reduction <maximumf>, %224, %cst_97 [1] : vector<16x16xf32> to vector<16xf32>
    %226 = vector.shape_cast %225 : vector<16xf32> to vector<16x1xf32>
    %227 = vector.broadcast %226 : vector<16x1xf32> to vector<16x16xf32>
    %228 = arith.subf %224, %227 : vector<16x16xf32>
    %229 = math.exp %228 : vector<16x16xf32>
    %cst_98 = arith.constant dense<0.000000e+00> : vector<16xf32>
    %230 = vector.multi_reduction <add>, %229, %cst_98 [1] : vector<16x16xf32> to vector<16xf32>
    %231 = vector.shape_cast %230 : vector<16xf32> to vector<16x1xf32>
    %232 = tpu.reciprocal %231 {approx = true} : vector<16x1xf32> -> vector<16x1xf32>
    %233 = vector.broadcast %232 : vector<16x1xf32> to vector<16x16xf32>
    %234 = arith.mulf %229, %233 : vector<16x16xf32>
    %cst_99 = arith.constant dense<0.000000e+00> : vector<16x8xf32>
    %235 = tpu.matmul %234, %222, %cst_99 {dimension_numbers = #tpu.dot_dimension_numbers<[1], [0], [0], [1], [0, 0, 1, 1], [], []>} : vector<16x16xf32>, vector<16x8xf32>, vector<16x8xf32> -> vector<16x8xf32>
    %236 = vector.extract_strided_slice %187 {offsets = [0, 24], sizes = [16, 8], strides = [1, 1]} : vector<16x96xf32> to vector<16x8xf32>
    %237 = vector.extract_strided_slice %187 {offsets = [0, 56], sizes = [16, 8], strides = [1, 1]} : vector<16x96xf32> to vector<16x8xf32>
    %238 = vector.extract_strided_slice %187 {offsets = [0, 88], sizes = [16, 8], strides = [1, 1]} : vector<16x96xf32> to vector<16x8xf32>
    %cst_100 = arith.constant dense<0.000000e+00> : vector<16x16xf32>
    %239 = tpu.matmul %236, %237, %cst_100 {dimension_numbers = #tpu.dot_dimension_numbers<[1], [1], [0], [0], [0, 0, 1, 0], [], []>} : vector<16x8xf32>, vector<16x8xf32>, vector<16x16xf32> -> vector<16x16xf32>
    %240 = arith.addf %239, %1 : vector<16x16xf32>
    %cst_101 = arith.constant dense<0xFF800000> : vector<16xf32>
    %241 = vector.multi_reduction <maximumf>, %240, %cst_101 [1] : vector<16x16xf32> to vector<16xf32>
    %242 = vector.shape_cast %241 : vector<16xf32> to vector<16x1xf32>
    %243 = vector.broadcast %242 : vector<16x1xf32> to vector<16x16xf32>
    %244 = arith.subf %240, %243 : vector<16x16xf32>
    %245 = math.exp %244 : vector<16x16xf32>
    %cst_102 = arith.constant dense<0.000000e+00> : vector<16xf32>
    %246 = vector.multi_reduction <add>, %245, %cst_102 [1] : vector<16x16xf32> to vector<16xf32>
    %247 = vector.shape_cast %246 : vector<16xf32> to vector<16x1xf32>
    %248 = tpu.reciprocal %247 {approx = true} : vector<16x1xf32> -> vector<16x1xf32>
    %249 = vector.broadcast %248 : vector<16x1xf32> to vector<16x16xf32>
    %250 = arith.mulf %245, %249 : vector<16x16xf32>
    %cst_103 = arith.constant dense<0.000000e+00> : vector<16x8xf32>
    %251 = tpu.matmul %250, %238, %cst_103 {dimension_numbers = #tpu.dot_dimension_numbers<[1], [0], [0], [1], [0, 0, 1, 1], [], []>} : vector<16x16xf32>, vector<16x8xf32>, vector<16x8xf32> -> vector<16x8xf32>
    %252 = tpu.concatenate %203, %219, %235, %251 in 1 : vector<16x8xf32>, vector<16x8xf32>, vector<16x8xf32>, vector<16x8xf32> -> vector<16x32xf32>
    %c1_104 = arith.constant 1 : index
    %c0_105 = arith.constant 0 : index
    %c0_106 = arith.constant 0 : index
    %253 = vector.load %arg7[%c1_104, %c0_105, %c0_106] : memref<2x32x32xf32, #tpu.memory_space<vmem>>, vector<1x32x32xf32>
    %254 = vector.shape_cast %253 : vector<1x32x32xf32> to vector<32x32xf32>
    %cst_107 = arith.constant dense<0.000000e+00> : vector<16x32xf32>
    %255 = tpu.matmul %252, %254, %cst_107 {dimension_numbers = #tpu.dot_dimension_numbers<[1], [0], [0], [1], [0, 0, 1, 1], [], []>} : vector<16x32xf32>, vector<32x32xf32>, vector<16x32xf32> -> vector<16x32xf32>
    %c1_108 = arith.constant 1 : index
    %c0_109 = arith.constant 0 : index
    %c0_110 = arith.constant 0 : index
    %256 = vector.load %arg8[%c1_108, %c0_109, %c0_110] : memref<2x1x32xf32, #tpu.memory_space<vmem>>, vector<1x1x32xf32>
    %257 = vector.shape_cast %256 : vector<1x1x32xf32> to vector<1x32xf32>
    %258 = vector.broadcast %257 : vector<1x32xf32> to vector<16x32xf32>
    %259 = arith.addf %255, %258 : vector<16x32xf32>
    %260 = arith.addf %259, %180 : vector<16x32xf32>
    %c1_111 = arith.constant 1 : index
    %c0_112 = arith.constant 0 : index
    %c0_113 = arith.constant 0 : index
    %261 = vector.load %arg13[%c1_111, %c0_112, %c0_113] : memref<2x1x32xf32, #tpu.memory_space<vmem>>, vector<1x1x32xf32>
    %262 = vector.shape_cast %261 : vector<1x1x32xf32> to vector<1x32xf32>
    %c1_114 = arith.constant 1 : index
    %c0_115 = arith.constant 0 : index
    %c0_116 = arith.constant 0 : index
    %263 = vector.load %arg14[%c1_114, %c0_115, %c0_116] : memref<2x1x32xf32, #tpu.memory_space<vmem>>, vector<1x1x32xf32>
    %264 = vector.shape_cast %263 : vector<1x1x32xf32> to vector<1x32xf32>
    %cst_117 = arith.constant dense<0.000000e+00> : vector<16xf32>
    %265 = vector.multi_reduction <add>, %260, %cst_117 [1] : vector<16x32xf32> to vector<16xf32>
    %266 = vector.shape_cast %265 : vector<16xf32> to vector<16x1xf32>
    %cst_118 = arith.constant 3.200000e+01 : f32
    %267 = vector.broadcast %cst_118 : f32 to vector<16x1xf32>
    %268 = arith.divf %266, %267 : vector<16x1xf32>
    %269 = vector.broadcast %268 : vector<16x1xf32> to vector<16x32xf32>
    %270 = arith.subf %260, %269 : vector<16x32xf32>
    %271 = arith.mulf %270, %270 : vector<16x32xf32>
    %cst_119 = arith.constant dense<0.000000e+00> : vector<16xf32>
    %272 = vector.multi_reduction <add>, %271, %cst_119 [1] : vector<16x32xf32> to vector<16xf32>
    %273 = vector.shape_cast %272 : vector<16xf32> to vector<16x1xf32>
    %cst_120 = arith.constant 3.200000e+01 : f32
    %274 = vector.broadcast %cst_120 : f32 to vector<16x1xf32>
    %275 = arith.divf %273, %274 : vector<16x1xf32>
    %cst_121 = arith.constant 9.99999996E-13 : f32
    %276 = vector.broadcast %cst_121 : f32 to vector<16x1xf32>
    %277 = arith.addf %275, %276 : vector<16x1xf32>
    %278 = math.rsqrt %277 : vector<16x1xf32>
    %279 = vector.broadcast %278 : vector<16x1xf32> to vector<16x32xf32>
    %280 = arith.mulf %270, %279 : vector<16x32xf32>
    %281 = vector.broadcast %262 : vector<1x32xf32> to vector<16x32xf32>
    %282 = arith.mulf %280, %281 : vector<16x32xf32>
    %283 = vector.broadcast %264 : vector<1x32xf32> to vector<16x32xf32>
    %284 = arith.addf %282, %283 : vector<16x32xf32>
    %c1_122 = arith.constant 1 : index
    %c0_123 = arith.constant 0 : index
    %c0_124 = arith.constant 0 : index
    %285 = vector.load %arg9[%c1_122, %c0_123, %c0_124] : memref<2x32x64xf32, #tpu.memory_space<vmem>>, vector<1x32x64xf32>
    %286 = vector.shape_cast %285 : vector<1x32x64xf32> to vector<32x64xf32>
    %cst_125 = arith.constant dense<0.000000e+00> : vector<16x64xf32>
    %287 = tpu.matmul %284, %286, %cst_125 {dimension_numbers = #tpu.dot_dimension_numbers<[1], [0], [0], [1], [0, 0, 1, 1], [], []>} : vector<16x32xf32>, vector<32x64xf32>, vector<16x64xf32> -> vector<16x64xf32>
    %c1_126 = arith.constant 1 : index
    %c0_127 = arith.constant 0 : index
    %c0_128 = arith.constant 0 : index
    %288 = vector.load %arg10[%c1_126, %c0_127, %c0_128] : memref<2x1x64xf32, #tpu.memory_space<vmem>>, vector<1x1x64xf32>
    %289 = vector.shape_cast %288 : vector<1x1x64xf32> to vector<1x64xf32>
    %290 = vector.broadcast %289 : vector<1x64xf32> to vector<16x64xf32>
    %291 = arith.addf %287, %290 : vector<16x64xf32>
    %cst_129 = arith.constant 5.000000e-01 : f32
    %292 = vector.broadcast %cst_129 : f32 to vector<16x64xf32>
    %293 = arith.mulf %292, %291 : vector<16x64xf32>
    %cst_130 = arith.constant 4.471500e-02 : f32
    %294 = vector.broadcast %cst_130 : f32 to vector<16x64xf32>
    %295 = arith.mulf %294, %291 : vector<16x64xf32>
    %296 = arith.mulf %295, %291 : vector<16x64xf32>
    %297 = arith.mulf %296, %291 : vector<16x64xf32>
    %298 = arith.addf %291, %297 : vector<16x64xf32>
    %cst_131 = arith.constant 0.797884583 : f32
    %299 = vector.broadcast %cst_131 : f32 to vector<16x64xf32>
    %300 = arith.mulf %299, %298 : vector<16x64xf32>
    %301 = math.tanh %300 : vector<16x64xf32>
    %cst_132 = arith.constant 1.000000e+00 : f32
    %302 = vector.broadcast %cst_132 : f32 to vector<16x64xf32>
    %303 = arith.addf %302, %301 : vector<16x64xf32>
    %304 = arith.mulf %293, %303 : vector<16x64xf32>
    %c1_133 = arith.constant 1 : index
    %c0_134 = arith.constant 0 : index
    %c0_135 = arith.constant 0 : index
    %305 = vector.load %arg11[%c1_133, %c0_134, %c0_135] : memref<2x64x32xf32, #tpu.memory_space<vmem>>, vector<1x64x32xf32>
    %306 = vector.shape_cast %305 : vector<1x64x32xf32> to vector<64x32xf32>
    %cst_136 = arith.constant dense<0.000000e+00> : vector<16x32xf32>
    %307 = tpu.matmul %304, %306, %cst_136 {dimension_numbers = #tpu.dot_dimension_numbers<[1], [0], [0], [1], [0, 0, 1, 1], [], []>} : vector<16x64xf32>, vector<64x32xf32>, vector<16x32xf32> -> vector<16x32xf32>
    %c1_137 = arith.constant 1 : index
    %c0_138 = arith.constant 0 : index
    %c0_139 = arith.constant 0 : index
    %308 = vector.load %arg12[%c1_137, %c0_138, %c0_139] : memref<2x1x32xf32, #tpu.memory_space<vmem>>, vector<1x1x32xf32>
    %309 = vector.shape_cast %308 : vector<1x1x32xf32> to vector<1x32xf32>
    %310 = vector.broadcast %309 : vector<1x32xf32> to vector<16x32xf32>
    %311 = arith.addf %307, %310 : vector<16x32xf32>
    %312 = arith.addf %311, %284 : vector<16x32xf32>
    %c1_140 = arith.constant 1 : index
    %c0_141 = arith.constant 0 : index
    %c0_142 = arith.constant 0 : index
    %313 = vector.load %arg15[%c1_140, %c0_141, %c0_142] : memref<2x1x32xf32, #tpu.memory_space<vmem>>, vector<1x1x32xf32>
    %314 = vector.shape_cast %313 : vector<1x1x32xf32> to vector<1x32xf32>
    %c1_143 = arith.constant 1 : index
    %c0_144 = arith.constant 0 : index
    %c0_145 = arith.constant 0 : index
    %315 = vector.load %arg16[%c1_143, %c0_144, %c0_145] : memref<2x1x32xf32, #tpu.memory_space<vmem>>, vector<1x1x32xf32>
    %316 = vector.shape_cast %315 : vector<1x1x32xf32> to vector<1x32xf32>
    %cst_146 = arith.constant dense<0.000000e+00> : vector<16xf32>
    %317 = vector.multi_reduction <add>, %312, %cst_146 [1] : vector<16x32xf32> to vector<16xf32>
    %318 = vector.shape_cast %317 : vector<16xf32> to vector<16x1xf32>
    %cst_147 = arith.constant 3.200000e+01 : f32
    %319 = vector.broadcast %cst_147 : f32 to vector<16x1xf32>
    %320 = arith.divf %318, %319 : vector<16x1xf32>
    %321 = vector.broadcast %320 : vector<16x1xf32> to vector<16x32xf32>
    %322 = arith.subf %312, %321 : vector<16x32xf32>
    %323 = arith.mulf %322, %322 : vector<16x32xf32>
    %cst_148 = arith.constant dense<0.000000e+00> : vector<16xf32>
    %324 = vector.multi_reduction <add>, %323, %cst_148 [1] : vector<16x32xf32> to vector<16xf32>
    %325 = vector.shape_cast %324 : vector<16xf32> to vector<16x1xf32>
    %cst_149 = arith.constant 3.200000e+01 : f32
    %326 = vector.broadcast %cst_149 : f32 to vector<16x1xf32>
    %327 = arith.divf %325, %326 : vector<16x1xf32>
    %cst_150 = arith.constant 9.99999996E-13 : f32
    %328 = vector.broadcast %cst_150 : f32 to vector<16x1xf32>
    %329 = arith.addf %327, %328 : vector<16x1xf32>
    %330 = math.rsqrt %329 : vector<16x1xf32>
    %331 = vector.broadcast %330 : vector<16x1xf32> to vector<16x32xf32>
    %332 = arith.mulf %322, %331 : vector<16x32xf32>
    %333 = vector.broadcast %314 : vector<1x32xf32> to vector<16x32xf32>
    %334 = arith.mulf %332, %333 : vector<16x32xf32>
    %335 = vector.broadcast %316 : vector<1x32xf32> to vector<16x32xf32>
    %336 = arith.addf %334, %335 : vector<16x32xf32>
    %337 = vector.extract_strided_slice %336 {offsets = [0, 0], sizes = [1, 32], strides = [1, 1]} : vector<16x32xf32> to vector<1x32xf32>
    %338 = vector.extract_strided_slice %336 {offsets = [8, 0], sizes = [1, 32], strides = [1, 1]} : vector<16x32xf32> to vector<1x32xf32>
    %339 = tpu.concatenate %337, %338 in 0 : vector<1x32xf32>, vector<1x32xf32> -> vector<2x32xf32>
    %c0_151 = arith.constant 0 : index
    %c0_152 = arith.constant 0 : index
    %340 = vector.load %arg17[%c0_151, %c0_152] : memref<32x32xf32, #tpu.memory_space<vmem>>, vector<32x32xf32>
    %cst_153 = arith.constant dense<0.000000e+00> : vector<2x32xf32>
    %341 = tpu.matmul %339, %340, %cst_153 {dimension_numbers = #tpu.dot_dimension_numbers<[1], [0], [0], [1], [0, 0, 1, 1], [], []>} : vector<2x32xf32>, vector<32x32xf32>, vector<2x32xf32> -> vector<2x32xf32>
    %c0_154 = arith.constant 0 : index
    %c0_155 = arith.constant 0 : index
    %342 = vector.load %arg18[%c0_154, %c0_155] : memref<1x32xf32, #tpu.memory_space<vmem>>, vector<1x32xf32>
    %343 = vector.broadcast %342 : vector<1x32xf32> to vector<2x32xf32>
    %344 = arith.addf %341, %343 : vector<2x32xf32>
    %345 = math.tanh %344 : vector<2x32xf32>
    %c0_156 = arith.constant 0 : index
    %c0_157 = arith.constant 0 : index
    %346 = vector.load %arg19[%c0_156, %c0_157] : memref<32x128xf32, #tpu.memory_space<vmem>>, vector<32x128xf32>
    %cst_158 = arith.constant dense<0.000000e+00> : vector<2x128xf32>
    %347 = tpu.matmul %345, %346, %cst_158 {dimension_numbers = #tpu.dot_dimension_numbers<[1], [0], [0], [1], [0, 0, 1, 1], [], []>} : vector<2x32xf32>, vector<32x128xf32>, vector<2x128xf32> -> vector<2x128xf32>
    %c0_159 = arith.constant 0 : index
    %c0_160 = arith.constant 0 : index
    %348 = vector.load %arg20[%c0_159, %c0_160] : memref<1x128xf32, #tpu.memory_space<vmem>>, vector<1x128xf32>
    %349 = vector.broadcast %348 : vector<1x128xf32> to vector<2x128xf32>
    %350 = arith.addf %347, %349 : vector<2x128xf32>
    %c0_161 = arith.constant 0 : index
    %c0_162 = arith.constant 0 : index
    %351 = vector.load %arg21[%c0_161, %c0_162] : memref<2x128xf32, #tpu.memory_space<vmem>>, vector<2x128xf32>
    tpu.vector_store %arg21[%c0_161, %c0_162], %350 {strides = array<i32>} : memref<2x128xf32, #tpu.memory_space<vmem>>, vector<2x128xf32>,
    return
  }
  func.func @transform_0(%arg0: i32) -> (i32, i32) {
    %c0_i32 = arith.constant 0 : i32
    %c0_i32_0 = arith.constant 0 : i32
    return %arg0, %c0_i32 : i32, i32
  }
  func.func @transform_1(%arg0: i32) -> (i32, i32, i32) {
    %c0_i32 = arith.constant 0 : i32
    %c0_i32_0 = arith.constant 0 : i32
    %c0_i32_1 = arith.constant 0 : i32
    return %arg0, %c0_i32, %c0_i32_0 : i32, i32, i32
  }
  func.func @transform_2(%arg0: i32) -> (i32, i32) {
    %c0_i32 = arith.constant 0 : i32
    %c0_i32_0 = arith.constant 0 : i32
    %c0_i32_1 = arith.constant 0 : i32
    return %c0_i32, %c0_i32_0 : i32, i32
  }
  func.func @transform_3(%arg0: i32) -> (i32, i32) {
    %c0_i32 = arith.constant 0 : i32
    %c0_i32_0 = arith.constant 0 : i32
    %c0_i32_1 = arith.constant 0 : i32
    return %c0_i32, %c0_i32_0 : i32, i32
  }
  func.func @transform_4(%arg0: i32) -> (i32, i32, i32) {
    %c0_i32 = arith.constant 0 : i32
    %c0_i32_0 = arith.constant 0 : i32
    %c0_i32_1 = arith.constant 0 : i32
    %c0_i32_2 = arith.constant 0 : i32
    return %c0_i32, %c0_i32_0, %c0_i32_1 : i32, i32, i32
  }
  func.func @transform_5(%arg0: i32) -> (i32, i32, i32) {
    %c0_i32 = arith.constant 0 : i32
    %c0_i32_0 = arith.constant 0 : i32
    %c0_i32_1 = arith.constant 0 : i32
    %c0_i32_2 = arith.constant 0 : i32
    return %c0_i32, %c0_i32_0, %c0_i32_1 : i32, i32, i32
  }
  func.func @transform_6(%arg0: i32) -> (i32, i32, i32) {
    %c0_i32 = arith.constant 0 : i32
    %c0_i32_0 = arith.constant 0 : i32
    %c0_i32_1 = arith.constant 0 : i32
    %c0_i32_2 = arith.constant 0 : i32
    return %c0_i32, %c0_i32_0, %c0_i32_1 : i32, i32, i32
  }
  func.func @transform_7(%arg0: i32) -> (i32, i32, i32) {
    %c0_i32 = arith.constant 0 : i32
    %c0_i32_0 = arith.constant 0 : i32
    %c0_i32_1 = arith.constant 0 : i32
    %c0_i32_2 = arith.constant 0 : i32
    return %c0_i32, %c0_i32_0, %c0_i32_1 : i32, i32, i32
  }
  func.func @transform_8(%arg0: i32) -> (i32, i32, i32) {
    %c0_i32 = arith.constant 0 : i32
    %c0_i32_0 = arith.constant 0 : i32
    %c0_i32_1 = arith.constant 0 : i32
    %c0_i32_2 = arith.constant 0 : i32
    return %c0_i32, %c0_i32_0, %c0_i32_1 : i32, i32, i32
  }
  func.func @transform_9(%arg0: i32) -> (i32, i32, i32) {
    %c0_i32 = arith.constant 0 : i32
    %c0_i32_0 = arith.constant 0 : i32
    %c0_i32_1 = arith.constant 0 : i32
    %c0_i32_2 = arith.constant 0 : i32
    return %c0_i32, %c0_i32_0, %c0_i32_1 : i32, i32, i32
  }
  func.func @transform_10(%arg0: i32) -> (i32, i32, i32) {
    %c0_i32 = arith.constant 0 : i32
    %c0_i32_0 = arith.constant 0 : i32
    %c0_i32_1 = arith.constant 0 : i32
    %c0_i32_2 = arith.constant 0 : i32
    return %c0_i32, %c0_i32_0, %c0_i32_1 : i32, i32, i32
  }
  func.func @transform_11(%arg0: i32) -> (i32, i32, i32) {
    %c0_i32 = arith.constant 0 : i32
    %c0_i32_0 = arith.constant 0 : i32
    %c0_i32_1 = arith.constant 0 : i32
    %c0_i32_2 = arith.constant 0 : i32
    return %c0_i32, %c0_i32_0, %c0_i32_1 : i32, i32, i32
  }
  func.func @transform_12(%arg0: i32) -> (i32, i32, i32) {
    %c0_i32 = arith.constant 0 : i32
    %c0_i32_0 = arith.constant 0 : i32
    %c0_i32_1 = arith.constant 0 : i32
    %c0_i32_2 = arith.constant 0 : i32
    return %c0_i32, %c0_i32_0, %c0_i32_1 : i32, i32, i32
  }
  func.func @transform_13(%arg0: i32) -> (i32, i32, i32) {
    %c0_i32 = arith.constant 0 : i32
    %c0_i32_0 = arith.constant 0 : i32
    %c0_i32_1 = arith.constant 0 : i32
    %c0_i32_2 = arith.constant 0 : i32
    return %c0_i32, %c0_i32_0, %c0_i32_1 : i32, i32, i32
  }
  func.func @transform_14(%arg0: i32) -> (i32, i32, i32) {
    %c0_i32 = arith.constant 0 : i32
    %c0_i32_0 = arith.constant 0 : i32
    %c0_i32_1 = arith.constant 0 : i32
    %c0_i32_2 = arith.constant 0 : i32
    return %c0_i32, %c0_i32_0, %c0_i32_1 : i32, i32, i32
  }
  func.func @transform_15(%arg0: i32) -> (i32, i32, i32) {
    %c0_i32 = arith.constant 0 : i32
    %c0_i32_0 = arith.constant 0 : i32
    %c0_i32_1 = arith.constant 0 : i32
    %c0_i32_2 = arith.constant 0 : i32
    return %c0_i32, %c0_i32_0, %c0_i32_1 : i32, i32, i32
  }
  func.func @transform_16(%arg0: i32) -> (i32, i32) {
    %c0_i32 = arith.constant 0 : i32
    %c0_i32_0 = arith.constant 0 : i32
    %c0_i32_1 = arith.constant 0 : i32
    return %c0_i32, %c0_i32_0 : i32, i32
  }
  func.func @transform_17(%arg0: i32) -> (i32, i32) {
    %c0_i32 = arith.constant 0 : i32
    %c0_i32_0 = arith.constant 0 : i32
    %c0_i32_1 = arith.constant 0 : i32
    return %c0_i32, %c0_i32_0 : i32, i32
  }
  func.func @transform_18(%arg0: i32) -> (i32, i32) {
    %c0_i32 = arith.constant 0 : i32
    %c0_i32_0 = arith.constant 0 : i32
    %c0_i32_1 = arith.constant 0 : i32
    return %c0_i32, %c0_i32_0 : i32, i32
  }
  func.func @transform_19(%arg0: i32) -> (i32, i32) {
    %c0_i32 = arith.constant 0 : i32
    %c0_i32_0 = arith.constant 0 : i32
    %c0_i32_1 = arith.constant 0 : i32
    return %c0_i32, %c0_i32_0 : i32, i32
  }
  func.func @transform_20(%arg0: i32) -> (i32, i32) {
    %c0_i32 = arith.constant 0 : i32
    %c0_i32_0 = arith.constant 0 : i32
    return %arg0, %c0_i32 : i32, i32
  }
}

</mosaic_0001>

<bundles_post_ra>
// kernel: bert_class_forward.1
= control target key start
LH: loop header
LB: loop body
LE: loop exit
PB: predicated region body
PF: predicated region fallthrough
CT: control target
= control target key end

     0   :  { %s2593_s0 = inlined_call_operand.vmem [shape: f32[16,32], index: 0, kind: input, shape index: {}]   ;;  %s2594_s1 = inlined_call_operand.vmem [shape: f32[1,16,16], index: 1, kind: input, shape index: {}]   ;;  %s2595_s2 = inlined_call_operand.vmem [shape: f32[1,32], index: 2, kind: input, shape index: {}]   ;;  %s2596_s3 = inlined_call_operand.vmem [shape: f32[1,32], index: 3, kind: input, shape index: {}]   ;;  %s2597_s4 = inlined_call_operand.vmem [shape: f32[2,32,96], index: 4, kind: input, shape index: {}]   ;;  %s2598_s5 = inlined_call_operand.vmem [shape: f32[2,1,96], index: 5, kind: input, shape index: {}]   ;;  %s2599_s6 = inlined_call_operand.vmem [shape: f32[2,32,32], index: 6, kind: input, shape index: {}]   ;;  %s2600_s7 = inlined_call_operand.vmem [shape: f32[2,1,32], index: 7, kind: input, shape index: {}]   ;;  %s2601_s8 = inlined_call_operand.vmem [shape: f32[2,32,64], index: 8, kind: input, shape index: {}]   ;;  %s2602_s9 = inlined_call_operand.vmem [shape: f32[2,1,64], index: 9, kind: input, shape index: {}]   ;;  %s2603_s10 = inlined_call_operand.vmem [shape: f32[2,64,32], index: 10, kind: input, shape index: {}]   ;;  %s2604_s11 = inlined_call_operand.vmem [shape: f32[2,1,32], index: 11, kind: input, shape index: {}]   ;;  %s2605_s12 = inlined_call_operand.vmem [shape: f32[2,1,32], index: 12, kind: input, shape index: {}]   ;;  %s2606_s13 = inlined_call_operand.vmem [shape: f32[2,1,32], index: 13, kind: input, shape index: {}]   ;;  %s2607_s14 = inlined_call_operand.vmem [shape: f32[2,1,32], index: 14, kind: input, shape index: {}]   ;;  %s2608_s15 = inlined_call_operand.vmem [shape: f32[2,1,32], index: 15, kind: input, shape index: {}]   ;;  %s2609_s16 = inlined_call_operand.vmem [shape: f32[32,32], index: 16, kind: input, shape index: {}]   ;;  %s2610_s17 = inlined_call_operand.vmem [shape: f32[1,32], index: 17, kind: input, shape index: {}]   ;;  %s2611_s18 = inlined_call_operand.vmem [shape: f32[32,128], index: 18, kind: input, shape index: {}]   ;;  %s2612_s19 = inlined_call_operand.vmem [shape: f32[1,128], index: 19, kind: input, shape index: {}]   ;;  %s2613_s20 = inlined_call_operand.hbm [shape: f32[2,128], index: 20, kind: output, shape index: {}]  }
   0x1   :  { %2633 = sst [smem:[#allocation5_spill]] %s2593_s0 }
   0x2   :  { %2634 = sst [smem:[#allocation6_spill]] %s2594_s1 }
   0x3   :  { %2635 = sst [smem:[#allocation7_spill]] %s2595_s2 }
   0x4   :  { %2636 = sst [smem:[#allocation8_spill]] %s2596_s3 }
   0x5   :  { %2637 = sst [smem:[#allocation9_spill]] %s2597_s4 }
   0x6   :  { %s2638_s23 = sld [smem:[#allocation5_spill]]  ;;  %vm72_vm0 = vcmask 261120  }
   0xc   :  { %v68_v0 = vld [vmem:[%s2638_s23] sm:$0xff]  ;;  %v69_v1 = vld [vmem:[%s2638_s23 + $0x8] sm:$0xff] }
   0xd   :  { %v73_v2 = vsel %vm72_vm0, %v68_v0, 0.0  ;;  %v76_v3 = vsel %vm72_vm0, %v69_v1, 0.0 }
   0xe   :  { %74 = vadd.xlane.f32.xlu0 %v73_v2 }
   0xf   :  { %25 = vsyncpa [#allocation3], 0  ;;  %v1923_v4 = vmov 32.0   ;;  %s2639_s26 = sld [smem:[#allocation9_spill]]  ;;  %v1783_v53 = vld [vmem:[%s2598_s5] ss:$0 sm:$0xff] }
  0x10   :  { %1801 = vrcp.f32 %v1923_v4  ;;  %s2640_s22 = sld [smem:[#allocation7_spill]]  ;;  %s1924_s27 = smov 88   ;;  %vm177_vm8 = vcmask 64512   ;;  %vm209_vm9 = vcmask 130048   ;;  %vm583_vm10 = vcmask 195584  }
  0x11   :  { %s2641_s2 = sld [smem:[#allocation8_spill]]  ;;  %s2631_s28 = smov 80  }
  0x12   :  { %s1926_s4 = smov 96   ;;  %s2625_s29 = smov 112  }
  0x13   :  { %s1928_s30 = smov 72   ;;  %s1929_s0 = smov 120  }
  0x14   :  { %s2621_s21 = smov 104   ;;  %s2642_s23 = sld [smem:[#allocation6_spill]] }
  0x15   :  { %v137_v21 = vld [vmem:[%s2639_s26 + $0x18] sm:$0xff]  ;;  %v136_v22 = vld [vmem:[%s2639_s26 + $0x10] sm:$0xff]  ;;  %v135_v23 = vld [vmem:[%s2639_s26 + $0x8] sm:$0xff]  ;;  %s2619_s25 = smov 64   ;;  %s2620_s3 = smov 56  }
  0x16   :  { %77 = vadd.xlane.f32.xlu0 %v76_v3  ;;  %v1802_v5 = vpop.eup %1801  ;;  %160 = vmatpush.msra.mxu0 %v137_v21  ;;  %v134_v24 = vld [vmem:[%s2639_s26] sm:$0xff]  ;;  %s2618_s1 = smov 40   ;;  %s2627_s24 = smov 24  }
  0x17   :  { %v80_v6 = vmul.f32 32.0, %v1802_v5  ;;  %vm84_vm1 = vweird.f32 %v1802_v5  ;;  %v1781_v39 = vld [vmem:[%s2640_s22] ss:$0 sm:$0xff]  ;;  %s2617_s22 = smov 48  }
  0x18   :  { %161 = vmatpush.msra.mxu0 %v136_v22  ;;  %v1782_v43 = vld [vmem:[%s2641_s2] ss:$0 sm:$0xff]  ;;  %s2629_s2 = smov 16  }
  0x19   :  { %v81_v7 = vsub.f32 1.0, %v80_v6 }
  0x1a   :  { %162 = vmatpush.msra.mxu0 %v135_v23 }
  0x1b   :  { %v82_v8 = vmul.f32 %v1802_v5, %v81_v7 }
  0x1c   :  { %163 = vmatpush.msra.mxu0 %v134_v24 }
  0x1d   :  { %v83_v9 = vadd.f32 %v1802_v5, %v82_v8  ;;  %v2142_v8 = vld [vmem:[%s2642_s23] sm:$0xff] }
  0x1f   :  { %v2052_v10 = vsel %vm84_vm1, %v1802_v5, %v83_v9 }
  0x81   :  { %v75_v11 = vpop.xlane.xlu0 %74 }
  0x82   :  { %v86_v12 = vmul.f32 %v2052_v10, %v75_v11 }
  0x84   :  { %v88_v13 = vsub.f32 %v68_v0, %v86_v12 }
  0x86   :  { %v90_v14 = vmul.f32 %v88_v13, %v88_v13 }
  0x88   :  { %v92_v15 = vsel %vm72_vm0, %v90_v14, 0.0 }
  0x89   :  { %93 = vadd.xlane.f32.xlu1 %v92_v15  ;;  %v78_v16 = vpop.xlane.xlu0 %77 }
  0x8a   :  { %v87_v17 = vmul.f32 %v2052_v10, %v78_v16 }
  0x8c   :  { %v89_v18 = vsub.f32 %v69_v1, %v87_v17 }
  0x8e   :  { %v91_v19 = vmul.f32 %v89_v18, %v89_v18 }
  0x90   :  { %v95_v20 = vsel %vm72_vm0, %v91_v19, 0.0 }
  0x91   :  { %96 = vadd.xlane.f32.xlu1 %v95_v20 }
  0xfc   :  { %v94_v25 = vpop.xlane.xlu1 %93 }
  0xfd   :  { %v98_v26 = vmul.f32 %v94_v25, %v2052_v10 }
  0xff   :  { %v100_v27 = vadd.f32 1e-12, %v98_v26 }
 0x101   :  { %1803 = vrsqrt.f32 %v100_v27  ;;  %vm108_vm3 = vweird.f32 %v100_v27 }
 0x104   :  { %v97_v28 = vpop.xlane.xlu1 %96 }
 0x105   :  { %v99_v29 = vmul.f32 %v97_v28, %v2052_v10 }
 0x107   :  { %v1804_v30 = vpop.eup %1803  ;;  %v101_v31 = vadd.f32 1e-12, %v99_v29 }
 0x108   :  { %v103_v32 = vmul.f32 %v1804_v30, %v100_v27  ;;  %vm109_vm2 = vweird.f32 %v1804_v30 }
 0x109   :  { %1805 = vrsqrt.f32 %v101_v31  ;;  %vm110_vm4 = vmor %vm108_vm3, %vm109_vm2  ;;  %vm118_vm6 = vweird.f32 %v101_v31  ;;  %vm748_vm2 = vcmask 523264  }
 0x10a   :  { %v104_v33 = vmul.f32 %v1804_v30, %v103_v32 }
 0x10c   :  { %v105_v34 = vmul.f32 0.5, %v104_v33 }
 0x10e   :  { %v106_v35 = vsub.f32 1.5, %v105_v34 }
 0x10f   :  { %v1806_v36 = vpop.eup %1805 }
 0x110   :  { %v107_v37 = vmul.f32 %v1804_v30, %v106_v35  ;;  %v113_v38 = vmul.f32 %v1806_v36, %v101_v31  ;;  %vm119_vm5 = vweird.f32 %v1806_v36 }
 0x111   :  { %vm120_vm7 = vmor %vm118_vm6, %vm119_vm5 }
 0x112   :  { %v111_v40 = vsel %vm110_vm4, %v1804_v30, %v107_v37  ;;  %v114_v41 = vmul.f32 %v1806_v36, %v113_v38 }
 0x113   :  { %v122_v42 = vmul.f32 %v111_v40, %v88_v13  ;;  %v2149_v13 = vld [vmem:[%s2642_s23 + $0x8] sm:$0xff]  ;;  %s2623_s23 = smov 8  }
 0x114   :  { %v115_v44 = vmul.f32 0.5, %v114_v41 }
 0x115   :  { %v127_v45 = vmul.f32 %v1781_v39, %v122_v42 }
 0x116   :  { %v116_v46 = vsub.f32 1.5, %v115_v44 }
 0x117   :  { %v2078_v47 = vadd.f32 %v1782_v43, %v127_v45 }
 0x118   :  { %v117_v48 = vmul.f32 %v1806_v36, %v116_v46 }
 0x119   :  { %1631 = vmatmul.msk.f32.vlgmr.msra.gmra.mxu0 %vm72_vm0, %v2078_v47 }
 0x11a   :  { %v121_v49 = vsel %vm120_vm7, %v1806_v36, %v117_v48 }
 0x11b   :  { %v123_v50 = vmul.f32 %v121_v49, %v89_v18 }
 0x11d   :  { %v128_v51 = vmul.f32 %v1781_v39, %v123_v50 }
 0x11f   :  { %v2082_v52 = vadd.f32 %v1782_v43, %v128_v51 }
 0x121   :  { %1632 = vmatmul.msk.f32.gmra.mxu0 %vm72_vm0, %v2082_v52 }
 0x196   :  { %v165_v54 = vpop.f32.mrf.mxu0 }
 0x197   :  { %v2089_v55 = vadd.f32 %v1783_v53, %v165_v54 }
 0x199   :  { %271 = vrot.lane.b32.xlu1 %v2089_v55, %s1924_s27 }
 0x19e   :  { %v168_v56 = vpop.f32.mrf.mxu0 }
 0x19f   :  { %v2093_v57 = vadd.f32 %v1783_v53, %v168_v56 }
 0x1a1   :  { %369 = vrot.lane.b32.xlu1 %v2093_v57, %s2631_s28  ;;  %273 = vrot.lane.b32.xlu0 %v2093_v57, %s1924_s27  ;;  %v2173_v35 = vpack.i.bf16 %v2089_v55, %v2093_v57 }
 0x1a2   :  { %175 = vrot.lane.b32.xlu2 %v2093_v57, %s1926_s4 }
 0x1a9   :  { %363 = vrot.lane.b32.xlu1 %v2089_v55, %s2625_s29  ;;  %463 = vrot.lane.b32.xlu0 %v2089_v55, %s1928_s30 }
 0x1aa   :  { %173 = vrot.lane.b32.xlu2 %v2089_v55, %s1926_s4 }
 0x1b1   :  { %367 = vrot.lane.b32.xlu0 %v2089_v55, %s2631_s28  ;;  %s2652_s28 = smov 16  }
 0x1b2   :  { %267 = vrot.lane.b32.xlu2 %v2089_v55, %s1929_s0 }
 0x1b9   :  { %365 = vrot.lane.b32.xlu0 %v2093_v57, %s2625_s29 }
 0x1ba   :  { %269 = vrot.lane.b32.xlu2 %v2093_v57, %s1929_s0 }
 0x1c2   :  { %465 = vrot.lane.b32.xlu2 %v2093_v57, %s1928_s30 }
 0x1ca   :  { %459 = vrot.lane.b32.xlu2 %v2089_v55, %s2621_s21 }
 0x1d2   :  { %461 = vrot.lane.b32.xlu2 %v2093_v57, %s2621_s21  ;;  %s2643_s21 = smov 80  }
 0x1fc   :  { %v176_v58 = vpop.permute.xlu2 %175 }
 0x1fd   :  { %1633 = vmatpush.xpose.msk.msra.mxu1 %vm177_vm8, %v176_v58 }
 0x204   :  { %v174_v59 = vpop.permute.xlu2 %173 }
 0x205   :  { %1634 = vmatpush.xpose.msk.msra.mxu1 %vm177_vm8, %v174_v59 }
 0x208   :  { %1635 = vmatmul.msk.f32.vlgmr.msra.gmra.mxu1 %vm177_vm8, %v2089_v55 }
 0x20b   :  { %v272_v60 = vpop.permute.xlu1 %271 }
 0x20c   :  { %v268_v61 = vpop.permute.xlu2 %267 }
 0x210   :  { %1636 = vmatmul.msk.f32.gmra.mxu1 %vm177_vm8, %v2093_v57 }
 0x213   :  { %v274_v62 = vpop.permute.xlu0 %273  ;;  %v370_v63 = vpop.permute.xlu1 %369 }
 0x214   :  { %v270_v0 = vpop.permute.xlu2 %269  ;;  %1639 = vmatpush.xpose.msk.msra.mxu3 %vm177_vm8, %v274_v62  ;;  %1645 = vmatpush.xpose.msk.msrb.mxu0 %vm177_vm8, %v370_v63 }
 0x218   :  { %1640 = vmatpush.xpose.msk.msra.mxu3 %vm177_vm8, %v272_v60 }
 0x21b   :  { %v464_v1 = vpop.permute.xlu0 %463  ;;  %1641 = vmatmul.msk.f32.vlgmr.msra.gmra.mxu3 %vm177_vm8, %v268_v61  ;;  %v364_v4 = vpop.permute.xlu1 %363 }
 0x21c   :  { %v466_v2 = vpop.permute.xlu2 %465 }
 0x21d   :  { %1651 = vmatpush.xpose.msk.msrb.mxu3 %vm177_vm8, %v466_v2 }
 0x221   :  { %1652 = vmatpush.xpose.msk.msrb.mxu3 %vm177_vm8, %v464_v1 }
 0x223   :  { %v368_v3 = vpop.permute.xlu0 %367  ;;  %1642 = vmatmul.msk.f32.gmra.mxu3 %vm177_vm8, %v270_v0 }
 0x224   :  { %1646 = vmatpush.xpose.msk.msrb.mxu0 %vm177_vm8, %v368_v3  ;;  %v460_v5 = vpop.permute.xlu2 %459 }
 0x227   :  { %1647 = vmatmul.msk.f32.vlgmr.msrb.gmra.mxu0 %vm177_vm8, %v364_v4 }
 0x22b   :  { %1653 = vmatmul.msk.f32.vlgmr.msrb.gmra.mxu3 %vm177_vm8, %v460_v5  ;;  %v366_v6 = vpop.permute.xlu0 %365 }
 0x22c   :  { %v462_v7 = vpop.permute.xlu2 %461 }
 0x22f   :  { %1648 = vmatmul.msk.f32.gmra.mxu0 %vm177_vm8, %v366_v6 }
 0x233   :  { %1654 = vmatmul.msk.f32.gmra.mxu3 %vm177_vm8, %v462_v7 }
 0x285   :  { %v203_v9 = vpop.f32.mrf.mxu1 }
 0x286   :  { %v204_v11 = vadd.f32 %v203_v9, %v2142_v8 }
 0x288   :  { %v210_v12 = vsel %vm209_vm9, %v204_v11, -inf }
 0x289   :  { %211 = vmax.xlane.f32.xlu2 %v210_v12 }
 0x28d   :  { %v206_v14 = vpop.f32.mrf.mxu1 }
 0x28e   :  { %v207_v15 = vadd.f32 %v206_v14, %v2149_v13 }
 0x290   :  { %v213_v16 = vsel %vm209_vm9, %v207_v15, -inf }
 0x291   :  { %214 = vmax.xlane.f32.xlu1 %v213_v16 }
 0x29e   :  { %v300_v17 = vpop.f32.mrf.mxu3 }
 0x29f   :  { %v301_v24 = vadd.f32 %v300_v17, %v2142_v8 }
 0x2a1   :  { %v306_v29 = vsel %vm209_vm9, %v301_v24, -inf }
 0x2a4   :  { %v396_v18 = vpop.f32.mrf.mxu0 }
 0x2a5   :  { %v397_v19 = vadd.f32 %v396_v18, %v2142_v8 }
 0x2a6   :  { %v303_v20 = vpop.f32.mrf.mxu3 }
 0x2a7   :  { %v2155_v21 = vadd.f32 %v303_v20, %v2149_v13  ;;  %v402_v22 = vsel %vm209_vm9, %v397_v19, -inf }
 0x2a8   :  { %403 = vmax.xlane.f32.xlu0 %v402_v22 }
 0x2a9   :  { %v309_v23 = vsel %vm209_vm9, %v2155_v21, -inf }
 0x2aa   :  { %310 = vmax.xlane.f32.xlu2 %v309_v23 }
 0x2ac   :  { %v399_v25 = vpop.f32.mrf.mxu0 }
 0x2ad   :  { %v2162_v26 = vadd.f32 %v399_v25, %v2149_v13 }
 0x2ae   :  { %v492_v27 = vpop.f32.mrf.mxu3 }
 0x2af   :  { %v405_v28 = vsel %vm209_vm9, %v2162_v26, -inf  ;;  %v493_v30 = vadd.f32 %v492_v27, %v2142_v8 }
 0x2b0   :  { %406 = vmax.xlane.f32.xlu1 %v405_v28  ;;  %307 = vmax.xlane.f32.xlu0 %v306_v29 }
 0x2b1   :  { %v498_v33 = vsel %vm209_vm9, %v493_v30, -inf }
 0x2b6   :  { %v495_v31 = vpop.f32.mrf.mxu3 }
 0x2b7   :  { %v496_v32 = vadd.f32 %v495_v31, %v2149_v13 }
 0x2b8   :  { %499 = vmax.xlane.f32.xlu1 %v498_v33 }
 0x2b9   :  { %v501_v34 = vsel %vm209_vm9, %v496_v32, -inf }
 0x2ba   :  { %502 = vmax.xlane.f32.xlu2 %v501_v34 }
 0x2d2   :  { %1742 = vrot.lane.b32.xlu2 %v2173_v35, %s2619_s25  ;;  %s2645_s25 = smov 104  }
 0x2fc   :  { %v212_v36 = vpop.xlane.xlu2 %211 }
 0x2fd   :  { %v216_v37 = vsub.f32 %v204_v11, %v212_v36 }
 0x2ff   :  { %v218_v38 = vmul.f32 1.442695, %v216_v37 }
 0x301   :  { %1807 = vpow2.f32 %v218_v38 }
 0x304   :  { %v215_v39 = vpop.xlane.xlu1 %214 }
 0x305   :  { %v217_v40 = vsub.f32 %v207_v15, %v215_v39 }
 0x307   :  { %v1808_v41 = vpop.eup %1807  ;;  %v220_v42 = vmul.f32 1.442695, %v217_v40 }
 0x308   :  { %v222_v43 = vsel %vm209_vm9, %v1808_v41, 0.0 }
 0x309   :  { %1809 = vpow2.f32 %v220_v42  ;;  %223 = vadd.xlane.f32.xlu0 %v222_v43 }
 0x30f   :  { %v1810_v44 = vpop.eup %1809 }
 0x310   :  { %v225_v45 = vsel %vm209_vm9, %v1810_v44, 0.0 }
 0x311   :  { %226 = vadd.xlane.f32.xlu1 %v225_v45 }
 0x31b   :  { %v404_v46 = vpop.xlane.xlu0 %403 }
 0x31c   :  { %v408_v48 = vsub.f32 %v397_v19, %v404_v46 }
 0x31d   :  { %v311_v53 = vpop.xlane.xlu2 %310 }
 0x31e   :  { %v410_v49 = vmul.f32 1.442695, %v408_v48  ;;  %v313_v4 = vsub.f32 %v2155_v21, %v311_v53 }
 0x320   :  { %1811 = vpow2.f32 %v410_v49  ;;  %v316_v5 = vmul.f32 1.442695, %v313_v4 }
 0x323   :  { %v308_v50 = vpop.xlane.xlu0 %307  ;;  %v407_v3 = vpop.xlane.xlu1 %406 }
 0x324   :  { %v312_v51 = vsub.f32 %v301_v24, %v308_v50  ;;  %v409_v25 = vsub.f32 %v2162_v26, %v407_v3 }
 0x326   :  { %v2179_v54 = vpop.eup %1811  ;;  %v314_v55 = vmul.f32 1.442695, %v312_v51  ;;  %v412_v28 = vmul.f32 1.442695, %v409_v25 }
 0x327   :  { %v414_v56 = vsel %vm209_vm9, %v2179_v54, 0.0 }
 0x328   :  { %415 = vadd.xlane.f32.xlu2 %v414_v56  ;;  %1813 = vpow2.f32 %v314_v55 }
 0x32a   :  { %1747 = vrot.lane.b32.xlu1 %v2173_v35, %s2620_s3  ;;  %s2650_s3 = smov 8  }
 0x32b   :  { %v500_v6 = vpop.xlane.xlu1 %499 }
 0x32c   :  { %v504_v7 = vsub.f32 %v493_v30, %v500_v6 }
 0x32d   :  { %v503_v57 = vpop.xlane.xlu2 %502 }
 0x32e   :  { %v1814_v58 = vpop.eup %1813  ;;  %v505_v63 = vsub.f32 %v496_v32, %v503_v57  ;;  %v506_v9 = vmul.f32 1.442695, %v504_v7 }
 0x32f   :  { %v318_v59 = vsel %vm209_vm9, %v1814_v58, 0.0 }
 0x330   :  { %319 = vadd.xlane.f32.xlu0 %v318_v59  ;;  %v508_v0 = vmul.f32 1.442695, %v505_v63  ;;  %v589_v63 = vld [vmem:[%s2599_s6 + $0x18] sm:$0xff] }
 0x331   :  { %612 = vmatpush.msra.mxu0 %v589_v63 }
 0x332   :  { %1815 = vpow2.f32 %v508_v0  ;;  %v588_v0 = vld [vmem:[%s2599_s6 + $0x10] sm:$0xff] }
 0x333   :  { %1817 = vpow2.f32 %v316_v5  ;;  %613 = vmatpush.msra.mxu0 %v588_v0 }
 0x334   :  { %1819 = vpow2.f32 %v506_v9 }
 0x335   :  { %v1743_v60 = vpop.permute.xlu2 %1742 }
 0x336   :  { %v1744_v61 = vunpack.i.l.bf16 %v1743_v60  ;;  %v1745_v62 = vunpack.i.h.bf16 %v1743_v60 }
 0x338   :  { %258 = vmatpush.msra.mxu2 %v1744_v61  ;;  %v2188_v1 = vpop.eup %1815 }
 0x339   :  { %v513_v2 = vsel %vm209_vm9, %v2188_v1, 0.0  ;;  %v1818_v11 = vpop.eup %1817 }
 0x33a   :  { %259 = vmatpush.msra.mxu2 %v1745_v62  ;;  %v321_v12 = vsel %vm209_vm9, %v1818_v11, 0.0  ;;  %v1820_v14 = vpop.eup %1819 }
 0x33b   :  { %v510_v15 = vsel %vm209_vm9, %v1820_v14, 0.0 }
 0x344   :  { %1752 = vrot.lane.b32.xlu0 %v2173_v35, %s2618_s1  ;;  %s2651_s1 = smov 24  }
 0x354   :  { %514 = vadd.xlane.f32.xlu1 %v513_v2  ;;  %v586_v2 = vld [vmem:[%s2599_s6] sm:$0xff] }
 0x36e   :  { %322 = vadd.xlane.f32.xlu0 %v321_v12 }
 0x376   :  { %511 = vadd.xlane.f32.xlu0 %v510_v15 }
 0x37c   :  { %v224_v16 = vpop.xlane.xlu0 %223 }
 0x37d   :  { %1821 = vrcp.f32 %v224_v16 }
 0x383   :  { %v1822_v17 = vpop.eup %1821 }
 0x384   :  { %v227_v18 = vpop.xlane.xlu1 %226  ;;  %v230_v19 = vmul.f32 %v1822_v17, %v1808_v41 }
 0x385   :  { %1823 = vrcp.f32 %v227_v18  ;;  %v1784_v18 = vld [vmem:[%s2600_s7] ss:$0 sm:$0xff] }
 0x386   :  { %1637 = vmatmul.msk.f32.vlgmr.msra.gmra.mxu2 %vm209_vm9, %v230_v19 }
 0x38a   :  { %1757 = vrot.lane.b32.xlu0 %v2173_v35, %s2617_s22 }
 0x38b   :  { %v1824_v20 = vpop.eup %1823 }
 0x38c   :  { %v231_v21 = vmul.f32 %v1824_v20, %v1810_v44 }
 0x38e   :  { %1638 = vmatmul.msk.f32.gmra.mxu2 %vm209_vm9, %v231_v21 }
 0x39b   :  { %v416_v42 = vpop.xlane.xlu2 %415 }
 0x39c   :  { %v1748_v22 = vpop.permute.xlu1 %1747 }
 0x39d   :  { %v1749_v23 = vunpack.i.l.bf16 %v1748_v22  ;;  %v1750_v24 = vunpack.i.h.bf16 %v1748_v22 }
 0x39f   :  { %354 = vmatpush.msrb.mxu2 %v1749_v23 }
 0x3a1   :  { %355 = vmatpush.msrb.mxu2 %v1750_v24 }
 0x3a3   :  { %v320_v27 = vpop.xlane.xlu0 %319 }
 0x3a4   :  { %1825 = vrcp.f32 %v320_v27 }
 0x3a5   :  { %1827 = vpow2.f32 %v412_v28 }
 0x3aa   :  { %v1826_v29 = vpop.eup %1825 }
 0x3ab   :  { %v326_v30 = vmul.f32 %v1826_v29, %v1814_v58  ;;  %v1828_v31 = vpop.eup %1827 }
 0x3ac   :  { %v417_v32 = vsel %vm209_vm9, %v1828_v31, 0.0 }
 0x3ad   :  { %1643 = vmatmul.msk.f32.vlgmr.msrb.gmra.mxu2 %vm209_vm9, %v326_v30 }
 0x3b4   :  { %418 = vadd.xlane.f32.xlu0 %v417_v32 }
 0x3b6   :  { %v1753_v33 = vpop.permute.xlu0 %1752 }
 0x3b7   :  { %v1754_v34 = vunpack.i.l.bf16 %v1753_v33  ;;  %v1755_v35 = vunpack.i.h.bf16 %v1753_v33 }
 0x3b9   :  { %546 = vmatpush.msra.mxu2 %v1754_v34 }
 0x3bb   :  { %547 = vmatpush.msra.mxu2 %v1755_v35 }
 0x3c7   :  { %v515_v39 = vpop.xlane.xlu1 %514 }
 0x3e1   :  { %v323_v36 = vpop.xlane.xlu0 %322 }
 0x3e2   :  { %1829 = vrcp.f32 %v323_v36 }
 0x3e8   :  { %v1830_v26 = vpop.eup %1829 }
 0x3e9   :  { %v512_v37 = vpop.xlane.xlu0 %511  ;;  %v327_v38 = vmul.f32 %v1830_v26, %v1818_v11  ;;  %v683_v26 = vld [vmem:[%s2601_s8 + $0x10] sm:$0xff] }
 0x3ea   :  { %1831 = vrcp.f32 %v512_v37  ;;  %v682_v37 = vld [vmem:[%s2601_s8 + $0x8] sm:$0xff] }
 0x3eb   :  { %1644 = vmatmul.msk.f32.gmra.mxu2 %vm209_vm9, %v327_v38  ;;  %1833 = vrcp.f32 %v515_v39  ;;  %v681_v38 = vld [vmem:[%s2601_s8] sm:$0xff] }
 0x3ec   :  { %1835 = vrcp.f32 %v416_v42 }
 0x3f0   :  { %v1832_v40 = vpop.eup %1831 }
 0x3f1   :  { %v518_v41 = vmul.f32 %v1832_v40, %v1820_v14  ;;  %v1834_v43 = vpop.eup %1833 }
 0x3f2   :  { %v519_v44 = vmul.f32 %v1834_v43, %v2188_v1  ;;  %v1836_v46 = vpop.eup %1835  ;;  %v587_v1 = vld [vmem:[%s2599_s6 + $0x8] sm:$0xff] }
 0x3f3   :  { %1655 = vmatmul.msk.f32.vlgmr.msra.gmra.mxu2 %vm209_vm9, %v518_v41  ;;  %v422_v50 = vmul.f32 %v1836_v46, %v2179_v54  ;;  %614 = vmatpush.msra.mxu0 %v587_v1 }
 0x3f5   :  { %615 = vmatpush.msra.mxu0 %v586_v2 }
 0x3fb   :  { %1656 = vmatmul.msk.f32.gmra.mxu2 %vm209_vm9, %v519_v44 }
 0x3fc   :  { %v1758_v45 = vpop.permute.xlu0 %1757 }
 0x3fd   :  { %v1759_v48 = vunpack.i.l.bf16 %v1758_v45  ;;  %v1760_v49 = vunpack.i.h.bf16 %v1758_v45 }
 0x3ff   :  { %450 = vmatpush.msrb.mxu1 %v1759_v48 }
 0x401   :  { %451 = vmatpush.msrb.mxu1 %v1760_v49  ;;  %v1785_v49 = vld [vmem:[%s2605_s12] ss:$0 sm:$0xff] }
 0x402   :  { %1649 = vmatmul.msk.f32.vlgmr.msrb.gmra.mxu1 %vm209_vm9, %v422_v50 }
 0x409   :  { %v261_v51 = vpop.f32.mrf.mxu2 }
 0x411   :  { %v264_v55 = vpop.f32.mrf.mxu2 }
 0x427   :  { %v419_v53 = vpop.xlane.xlu0 %418 }
 0x428   :  { %1837 = vrcp.f32 %v419_v53  ;;  %v1786_v53 = vld [vmem:[%s2606_s13] ss:$0 sm:$0xff] }
 0x42e   :  { %v1838_v56 = vpop.eup %1837 }
 0x42f   :  { %v423_v57 = vmul.f32 %v1838_v56, %v1828_v31 }
 0x430   :  { %v357_v58 = vpop.f32.mrf.mxu2 }
 0x431   :  { %1650 = vmatmul.msk.f32.gmra.mxu1 %vm209_vm9, %v423_v57  ;;  %557 = vrot.lane.b32.xlu2 %v357_v58, %s2623_s23 }
 0x46e   :  { %v360_v59 = vpop.f32.mrf.mxu2 }
 0x476   :  { %v549_v60 = vpop.f32.mrf.mxu2 }
 0x477   :  { %573 = vrot.lane.b32.xlu2 %v549_v60, %s2627_s24 }
 0x47e   :  { %v552_v61 = vpop.f32.mrf.mxu2 }
 0x47f   :  { %v453_v54 = vpop.f32.mrf.mxu1  ;;  %559 = vrot.lane.b32.xlu2 %v360_v59, %s2623_s23 }
 0x480   :  { %565 = vrot.lane.b32.xlu1 %v453_v54, %s2629_s2 }
 0x488   :  { %575 = vrot.lane.b32.xlu1 %v552_v61, %s2627_s24 }
 0x48b   :  { %v558_v3 = vpop.permute.xlu2 %557 }
 0x48c   :  { %v579_v4 = vsel %vm177_vm8, %v261_v51, %v558_v3 }
 0x4ae   :  { %v456_v62 = vpop.f32.mrf.mxu1 }
 0x4af   :  { %567 = vrot.lane.b32.xlu0 %v456_v62, %s2629_s2  ;;  %s1938_s2 = smov [#allocation2]  }
 0x4d1   :  { %v574_v6 = vpop.permute.xlu2 %573 }
 0x4d9   :  { %v560_v11 = vpop.permute.xlu2 %559 }
 0x4da   :  { %v580_v12 = vsel %vm177_vm8, %v264_v55, %v560_v11  ;;  %v739_v11 = vld [vmem:[%s2603_s10 + $0x18] sm:$0xff] }
 0x4f2   :  { %v566_v5 = vpop.permute.xlu1 %565 }
 0x4f3   :  { %v581_v7 = vsel %vm209_vm9, %v579_v4, %v566_v5  ;;  %v743_v5 = vld [vmem:[%s2603_s10 + $0x38] sm:$0xff] }
 0x4f4   :  { %v584_v9 = vsel %vm583_vm10, %v581_v7, %v574_v6  ;;  %763 = vmatpush.msra.mxu3 %v743_v5  ;;  %v742_v6 = vld [vmem:[%s2603_s10 + $0x30] sm:$0xff]  ;;  %v741_v7 = vld [vmem:[%s2603_s10 + $0x28] sm:$0xff] }
 0x4f5   :  { %1657 = vmatmul.msk.f32.vlgmr.msra.gmra.mxu0 %vm72_vm0, %v584_v9  ;;  %v740_v9 = vld [vmem:[%s2603_s10 + $0x20] sm:$0xff] }
 0x4f6   :  { %764 = vmatpush.msra.mxu3 %v742_v6 }
 0x4f8   :  { %765 = vmatpush.msra.mxu3 %v741_v7  ;;  %v1789_v7 = vld [vmem:[%s2607_s14] ss:$0 sm:$0xff] }
 0x4fa   :  { %v576_v15 = vpop.permute.xlu1 %575  ;;  %766 = vmatpush.msra.mxu3 %v740_v9 }
 0x4fc   :  { %767 = vmatpush.msra.mxu3 %v739_v11 }
 0x521   :  { %v568_v14 = vpop.permute.xlu0 %567 }
 0x522   :  { %v582_v16 = vsel %vm209_vm9, %v580_v12, %v568_v14  ;;  %v738_v12 = vld [vmem:[%s2603_s10 + $0x10] sm:$0xff]  ;;  %v737_v14 = vld [vmem:[%s2603_s10 + $0x8] sm:$0xff] }
 0x523   :  { %v585_v17 = vsel %vm583_vm10, %v582_v16, %v576_v15  ;;  %768 = vmatpush.msra.mxu3 %v738_v12  ;;  %v736_v15 = vld [vmem:[%s2603_s10] sm:$0xff] }
 0x524   :  { %1658 = vmatmul.msk.f32.gmra.mxu0 %vm72_vm0, %v585_v17  ;;  %v1787_v16 = vld [vmem:[%s2602_s9] ss:$0 sm:$0xff] }
 0x525   :  { %769 = vmatpush.msra.mxu3 %v737_v14  ;;  %v1790_v12 = vld [vmem:[%s2608_s15] ss:$0 sm:$0xff] }
 0x527   :  { %770 = vmatpush.msra.mxu3 %v736_v15 }
 0x572   :  { %v617_v19 = vpop.f32.mrf.mxu0 }
 0x573   :  { %v618_v20 = vadd.f32 %v1784_v18, %v617_v19 }
 0x575   :  { %v623_v21 = vadd.f32 %v618_v20, %v2078_v47 }
 0x577   :  { %v627_v22 = vsel %vm72_vm0, %v623_v21, 0.0 }
 0x578   :  { %628 = vadd.xlane.f32.xlu2 %v627_v22 }
 0x5a1   :  { %v620_v23 = vpop.f32.mrf.mxu0 }
 0x5a2   :  { %v621_v24 = vadd.f32 %v1784_v18, %v620_v23 }
 0x5a4   :  { %v624_v25 = vadd.f32 %v621_v24, %v2082_v52  ;;  %v684_v52 = vld [vmem:[%s2601_s8 + $0x18] sm:$0xff] }
 0x5a5   :  { %707 = vmatpush.msra.mxu1 %v684_v52 }
 0x5a6   :  { %v630_v27 = vsel %vm72_vm0, %v624_v25, 0.0 }
 0x5a7   :  { %631 = vadd.xlane.f32.xlu1 %v630_v27  ;;  %708 = vmatpush.msra.mxu1 %v683_v26 }
 0x5a9   :  { %709 = vmatpush.msra.mxu1 %v682_v37  ;;  %v1788_v37 = vld [vmem:[%s2604_s11] ss:$0 sm:$0xff] }
 0x5ab   :  { %710 = vmatpush.msra.mxu1 %v681_v38 }
 0x5eb   :  { %v629_v28 = vpop.xlane.xlu2 %628 }
 0x5ec   :  { %v633_v29 = vmul.f32 %v629_v28, %v2052_v10 }
 0x5ee   :  { %v635_v30 = vsub.f32 %v623_v21, %v633_v29 }
 0x5f0   :  { %v637_v31 = vmul.f32 %v635_v30, %v635_v30 }
 0x5f2   :  { %v639_v32 = vsel %vm72_vm0, %v637_v31, 0.0 }
 0x5f3   :  { %640 = vadd.xlane.f32.xlu0 %v639_v32 }
 0x61a   :  { %v632_v33 = vpop.xlane.xlu1 %631 }
 0x61b   :  { %v634_v47 = vmul.f32 %v632_v33, %v2052_v10 }
 0x61d   :  { %v636_v34 = vsub.f32 %v624_v25, %v634_v47 }
 0x61f   :  { %v638_v35 = vmul.f32 %v636_v34, %v636_v34 }
 0x621   :  { %v642_v36 = vsel %vm72_vm0, %v638_v35, 0.0 }
 0x622   :  { %643 = vadd.xlane.f32.xlu2 %v642_v36 }
 0x666   :  { %v641_v39 = vpop.xlane.xlu0 %640 }
 0x667   :  { %v645_v40 = vmul.f32 %v641_v39, %v2052_v10 }
 0x669   :  { %v647_v41 = vadd.f32 1e-12, %v645_v40 }
 0x66b   :  { %1839 = vrsqrt.f32 %v647_v41  ;;  %vm655_vm12 = vweird.f32 %v647_v41 }
 0x671   :  { %v1840_v42 = vpop.eup %1839 }
 0x672   :  { %v650_v43 = vmul.f32 %v1840_v42, %v647_v41  ;;  %vm656_vm11 = vweird.f32 %v1840_v42 }
 0x673   :  { %vm657_vm13 = vmor %vm655_vm12, %vm656_vm11 }
 0x674   :  { %v651_v44 = vmul.f32 %v1840_v42, %v650_v43 }
 0x676   :  { %v652_v45 = vmul.f32 0.5, %v651_v44 }
 0x678   :  { %v653_v46 = vsub.f32 1.5, %v652_v45 }
 0x67a   :  { %v654_v48 = vmul.f32 %v1840_v42, %v653_v46 }
 0x67c   :  { %v658_v50 = vsel %vm657_vm13, %v1840_v42, %v654_v48 }
 0x67d   :  { %v669_v51 = vmul.f32 %v658_v50, %v635_v30 }
 0x67f   :  { %v674_v55 = vmul.f32 %v1785_v49, %v669_v51 }
 0x681   :  { %v2265_v56 = vadd.f32 %v1786_v53, %v674_v55 }
 0x683   :  { %1659 = vmatmul.msk.f32.vlgmr.msra.gmra.mxu1 %vm72_vm0, %v2265_v56 }
 0x695   :  { %v644_v57 = vpop.xlane.xlu2 %643 }
 0x696   :  { %v646_v58 = vmul.f32 %v644_v57, %v2052_v10 }
 0x698   :  { %v648_v59 = vadd.f32 1e-12, %v646_v58 }
 0x69a   :  { %1841 = vrsqrt.f32 %v648_v59  ;;  %vm665_vm15 = vweird.f32 %v648_v59 }
 0x6a0   :  { %v1842_v60 = vpop.eup %1841 }
 0x6a1   :  { %v660_v54 = vmul.f32 %v1842_v60, %v648_v59  ;;  %vm666_vm14 = vweird.f32 %v1842_v60  ;;  %v1666_v59 = vld [vmem:[%s2639_s26 + $0x38] sm:$0xff] }
 0x6a2   :  { %vm667_vm1 = vmor %vm665_vm15, %vm666_vm14  ;;  %864 = vmatpush.msrb.mxu2 %v1666_v59 }
 0x6a3   :  { %v661_v61 = vmul.f32 %v1842_v60, %v660_v54  ;;  %v1664_v54 = vld [vmem:[%s2639_s26 + $0x28] sm:$0xff] }
 0x6a5   :  { %v662_v62 = vmul.f32 0.5, %v661_v61  ;;  %v1663_v61 = vld [vmem:[%s2639_s26 + $0x20] sm:$0xff] }
 0x6a7   :  { %v663_v63 = vsub.f32 1.5, %v662_v62 }
 0x6a9   :  { %v664_v0 = vmul.f32 %v1842_v60, %v663_v63 }
 0x6ab   :  { %v668_v1 = vsel %vm667_vm1, %v1842_v60, %v664_v0  ;;  %v1665_v60 = vld [vmem:[%s2639_s26 + $0x30] sm:$0xff] }
 0x6ac   :  { %v670_v2 = vmul.f32 %v668_v1, %v636_v34  ;;  %865 = vmatpush.msrb.mxu2 %v1665_v60 }
 0x6ae   :  { %v675_v3 = vmul.f32 %v1785_v49, %v670_v2  ;;  %866 = vmatpush.msrb.mxu2 %v1664_v54 }
 0x6b0   :  { %v680_v4 = vadd.f32 %v1786_v53, %v675_v3  ;;  %867 = vmatpush.msrb.mxu2 %v1663_v61 }
 0x6b2   :  { %1660 = vmatmul.msk.f32.gmra.mxu1 %vm72_vm0, %v680_v4 }
 0x700   :  { %v712_v17 = vpop.f32.mrf.mxu1 }
 0x701   :  { %v713_v18 = vadd.f32 %v1787_v16, %v712_v17 }
 0x703   :  { %v720_v19 = vmul.f32 0.044715, %v713_v18  ;;  %v718_v25 = vmul.f32 0.5, %v713_v18 }
 0x705   :  { %v722_v20 = vmul.f32 %v720_v19, %v713_v18 }
 0x707   :  { %v724_v21 = vmul.f32 %v722_v20, %v713_v18 }
 0x709   :  { %v726_v22 = vadd.f32 %v724_v21, %v713_v18 }
 0x70b   :  { %v728_v23 = vmul.f32 0.7978846, %v726_v22 }
 0x70d   :  { %1843 = vtanh.f32 %v728_v23 }
 0x713   :  { %v1844_v24 = vpop.eup %1843 }
 0x714   :  { %v732_v27 = vadd.f32 1.0, %v1844_v24 }
 0x716   :  { %v734_v28 = vmul.f32 %v732_v27, %v718_v25 }
 0x718   :  { %1661 = vmatmul.msk.f32.vlgmr.msra.gmra.mxu3 %vm748_vm2, %v734_v28 }
 0x72f   :  { %v715_v29 = vpop.f32.mrf.mxu1 }
 0x730   :  { %v716_v30 = vadd.f32 %v1787_v16, %v715_v29 }
 0x732   :  { %v721_v31 = vmul.f32 0.044715, %v716_v30  ;;  %v719_v36 = vmul.f32 0.5, %v716_v30 }
 0x734   :  { %v723_v32 = vmul.f32 %v721_v31, %v716_v30 }
 0x736   :  { %v725_v33 = vmul.f32 %v723_v32, %v716_v30 }
 0x738   :  { %v727_v47 = vadd.f32 %v725_v33, %v716_v30  ;;  %v1791_v30 = vld [vmem:[%s2598_s5 + $0x1] ss:$0 sm:$0xff]  ;;  %s2644_s5 = smov 112  }
 0x73a   :  { %v729_v34 = vmul.f32 0.7978846, %v727_v47 }
 0x73c   :  { %1845 = vtanh.f32 %v729_v34 }
 0x742   :  { %v1846_v35 = vpop.eup %1845 }
 0x743   :  { %v733_v52 = vadd.f32 1.0, %v1846_v35 }
 0x745   :  { %v735_v26 = vmul.f32 %v733_v52, %v719_v36 }
 0x747   :  { %1662 = vmatmul.msk.f32.gmra.mxu3 %vm748_vm2, %v735_v26 }
 0x79b   :  { %v772_v38 = vpop.f32.mrf.mxu3 }
 0x79c   :  { %v773_v39 = vadd.f32 %v1788_v37, %v772_v38 }
 0x79e   :  { %v778_v40 = vadd.f32 %v773_v39, %v2265_v56 }
 0x7a0   :  { %v782_v41 = vsel %vm72_vm0, %v778_v40, 0.0 }
 0x7a1   :  { %783 = vadd.xlane.f32.xlu1 %v782_v41 }
 0x7ca   :  { %v775_v42 = vpop.f32.mrf.mxu3 }
 0x7cb   :  { %v776_v43 = vadd.f32 %v1788_v37, %v775_v42 }
 0x7cd   :  { %v779_v44 = vadd.f32 %v776_v43, %v680_v4 }
 0x7cf   :  { %v785_v45 = vsel %vm72_vm0, %v779_v44, 0.0 }
 0x7d0   :  { %786 = vadd.xlane.f32.xlu2 %v785_v45 }
 0x814   :  { %v784_v46 = vpop.xlane.xlu1 %783 }
 0x815   :  { %v788_v48 = vmul.f32 %v784_v46, %v2052_v10 }
 0x817   :  { %v790_v49 = vsub.f32 %v778_v40, %v788_v48 }
 0x819   :  { %v792_v50 = vmul.f32 %v790_v49, %v790_v49 }
 0x81b   :  { %v794_v51 = vsel %vm72_vm0, %v792_v50, 0.0 }
 0x81c   :  { %795 = vadd.xlane.f32.xlu1 %v794_v51 }
 0x843   :  { %v787_v53 = vpop.xlane.xlu2 %786 }
 0x844   :  { %v789_v55 = vmul.f32 %v787_v53, %v2052_v10 }
 0x846   :  { %v791_v56 = vsub.f32 %v779_v44, %v789_v55 }
 0x848   :  { %v793_v57 = vmul.f32 %v791_v56, %v791_v56 }
 0x84a   :  { %v797_v58 = vsel %vm72_vm0, %v793_v57, 0.0 }
 0x84b   :  { %798 = vadd.xlane.f32.xlu0 %v797_v58 }
 0x88f   :  { %v796_v62 = vpop.xlane.xlu1 %795 }
 0x890   :  { %v800_v63 = vmul.f32 %v796_v62, %v2052_v10 }
 0x892   :  { %v802_v0 = vadd.f32 1e-12, %v800_v63 }
 0x894   :  { %1847 = vrsqrt.f32 %v802_v0  ;;  %vm810_vm4 = vweird.f32 %v802_v0 }
 0x89a   :  { %v1848_v1 = vpop.eup %1847 }
 0x89b   :  { %v805_v2 = vmul.f32 %v1848_v1, %v802_v0  ;;  %vm811_vm3 = vweird.f32 %v1848_v1 }
 0x89c   :  { %vm812_vm5 = vmor %vm810_vm4, %vm811_vm3 }
 0x89d   :  { %v806_v3 = vmul.f32 %v1848_v1, %v805_v2 }
 0x89f   :  { %v807_v4 = vmul.f32 0.5, %v806_v3 }
 0x8a1   :  { %v808_v5 = vsub.f32 1.5, %v807_v4 }
 0x8a3   :  { %v809_v6 = vmul.f32 %v1848_v1, %v808_v5 }
 0x8a5   :  { %v813_v9 = vsel %vm812_vm5, %v1848_v1, %v809_v6 }
 0x8a6   :  { %v824_v11 = vmul.f32 %v813_v9, %v790_v49 }
 0x8a8   :  { %v829_v14 = vmul.f32 %v1789_v7, %v824_v11 }
 0x8aa   :  { %v2329_v15 = vadd.f32 %v1790_v12, %v829_v14 }
 0x8ac   :  { %1668 = vmatmul.msk.f32.vlgmr.msrb.gmra.mxu2 %vm72_vm0, %v2329_v15 }
 0x8be   :  { %v799_v16 = vpop.xlane.xlu0 %798 }
 0x8bf   :  { %v801_v17 = vmul.f32 %v799_v16, %v2052_v10 }
 0x8c1   :  { %v803_v18 = vadd.f32 1e-12, %v801_v17 }
 0x8c3   :  { %1849 = vrsqrt.f32 %v803_v18  ;;  %vm820_vm7 = vweird.f32 %v803_v18 }
 0x8c9   :  { %v1850_v19 = vpop.eup %1849 }
 0x8ca   :  { %v815_v20 = vmul.f32 %v1850_v19, %v803_v18  ;;  %vm821_vm6 = vweird.f32 %v1850_v19 }
 0x8cb   :  { %vm822_vm11 = vmor %vm820_vm7, %vm821_vm6  ;;  %vm1549_vm6 = vcmask 1040384  }
 0x8cc   :  { %v816_v21 = vmul.f32 %v1850_v19, %v815_v20 }
 0x8ce   :  { %v817_v22 = vmul.f32 0.5, %v816_v21 }
 0x8d0   :  { %v818_v23 = vsub.f32 1.5, %v817_v22 }
 0x8d2   :  { %v819_v24 = vmul.f32 %v1850_v19, %v818_v23 }
 0x8d4   :  { %v823_v25 = vsel %vm822_vm11, %v1850_v19, %v819_v24 }
 0x8d5   :  { %v825_v27 = vmul.f32 %v823_v25, %v791_v56 }
 0x8d7   :  { %v830_v28 = vmul.f32 %v1789_v7, %v825_v27 }
 0x8d9   :  { %v2334_v29 = vadd.f32 %v1790_v12, %v830_v28 }
 0x8db   :  { %1669 = vmatmul.msk.f32.gmra.mxu2 %vm72_vm0, %v2334_v29 }
 0x92f   :  { %v869_v31 = vpop.f32.mrf.mxu2 }
 0x930   :  { %v2341_v32 = vadd.f32 %v1791_v30, %v869_v31 }
 0x932   :  { %969 = vrot.lane.b32.xlu0 %v2341_v32, %s1929_s0  ;;  %973 = vrot.lane.b32.xlu1 %v2341_v32, %s1924_s27 }
 0x93a   :  { %877 = vrot.lane.b32.xlu0 %v2341_v32, %s1926_s4 }
 0x942   :  { %1165 = vrot.lane.b32.xlu0 %v2341_v32, %s1928_s30 }
 0x94a   :  { %1069 = vrot.lane.b32.xlu0 %v2341_v32, %s2643_s21 }
 0x95e   :  { %v872_v33 = vpop.f32.mrf.mxu2 }
 0x95f   :  { %v2353_v47 = vadd.f32 %v1791_v30, %v872_v33 }
 0x961   :  { %975 = vrot.lane.b32.xlu2 %v2353_v47, %s1924_s27  ;;  %1067 = vrot.lane.b32.xlu0 %v2353_v47, %s2644_s5  ;;  %v1761_v7 = vpack.i.bf16 %v2341_v32, %v2353_v47  ;;  %s2646_s27 = smov 56  }
 0x962   :  { %971 = vrot.lane.b32.xlu1 %v2353_v47, %s1929_s0  ;;  %s2649_s0 = smov 48  }
 0x969   :  { %879 = vrot.lane.b32.xlu2 %v2353_v47, %s1926_s4  ;;  %s2647_s4 = smov 64  }
 0x96a   :  { %1161 = vrot.lane.b32.xlu1 %v2341_v32, %s2645_s25 }
 0x971   :  { %1167 = vrot.lane.b32.xlu2 %v2353_v47, %s1928_s30  ;;  %s2648_s30 = smov 40  }
 0x972   :  { %1163 = vrot.lane.b32.xlu1 %v2353_v47, %s2645_s25 }
 0x979   :  { %1071 = vrot.lane.b32.xlu2 %v2353_v47, %s2643_s21 }
 0x981   :  { %1065 = vrot.lane.b32.xlu2 %v2341_v32, %s2644_s5 }
 0x9a4   :  { %v970_v34 = vpop.permute.xlu0 %969  ;;  %v974_v36 = vpop.permute.xlu1 %973 }
 0x9ac   :  { %v878_v52 = vpop.permute.xlu0 %877 }
 0x9b4   :  { %v1166_v38 = vpop.permute.xlu0 %1165 }
 0x9bb   :  { %v976_v35 = vpop.permute.xlu2 %975 }
 0x9bc   :  { %1676 = vmatpush.xpose.msk.msrb.mxu3 %vm177_vm8, %v976_v35  ;;  %v1070_v41 = vpop.permute.xlu0 %1069 }
 0x9c0   :  { %1677 = vmatpush.xpose.msk.msrb.mxu3 %vm177_vm8, %v974_v36 }
 0x9c3   :  { %v880_v26 = vpop.permute.xlu2 %879  ;;  %1678 = vmatmul.msk.f32.vlgmr.msrb.gmra.mxu3 %vm177_vm8, %v970_v34 }
 0x9c4   :  { %1670 = vmatpush.xpose.msk.msrb.mxu0 %vm177_vm8, %v880_v26 }
 0x9c8   :  { %1671 = vmatpush.xpose.msk.msrb.mxu0 %vm177_vm8, %v878_v52 }
 0x9cb   :  { %v1168_v37 = vpop.permute.xlu2 %1167  ;;  %1672 = vmatmul.msk.f32.vlgmr.msrb.gmra.mxu0 %vm177_vm8, %v2341_v32 }
 0x9cc   :  { %1688 = vmatpush.xpose.msk.msra.mxu3 %vm177_vm8, %v1168_v37 }
 0x9d0   :  { %1689 = vmatpush.xpose.msk.msra.mxu3 %vm177_vm8, %v1166_v38 }
 0x9d3   :  { %v1072_v39 = vpop.permute.xlu2 %1071  ;;  %1673 = vmatmul.msk.f32.gmra.mxu0 %vm177_vm8, %v2353_v47  ;;  %v1068_v44 = vpop.permute.xlu0 %1067 }
 0x9d4   :  { %v972_v40 = vpop.permute.xlu1 %971  ;;  %1682 = vmatpush.xpose.msk.msra.mxu0 %vm177_vm8, %v1072_v39 }
 0x9d5   :  { %1679 = vmatmul.msk.f32.gmra.mxu3 %vm177_vm8, %v972_v40 }
 0x9d8   :  { %1683 = vmatpush.xpose.msk.msra.mxu0 %vm177_vm8, %v1070_v41 }
 0x9db   :  { %v1066_v42 = vpop.permute.xlu2 %1065 }
 0x9dc   :  { %v1162_v43 = vpop.permute.xlu1 %1161  ;;  %1684 = vmatmul.msk.f32.vlgmr.msra.gmra.mxu0 %vm177_vm8, %v1066_v42 }
 0x9dd   :  { %1690 = vmatmul.msk.f32.vlgmr.msra.gmra.mxu3 %vm177_vm8, %v1162_v43 }
 0x9e4   :  { %v1164_v45 = vpop.permute.xlu1 %1163  ;;  %1685 = vmatmul.msk.f32.gmra.mxu0 %vm177_vm8, %v1068_v44 }
 0x9e5   :  { %1691 = vmatmul.msk.f32.gmra.mxu3 %vm177_vm8, %v1164_v45 }
 0xa46   :  { %v1002_v46 = vpop.f32.mrf.mxu3 }
 0xa47   :  { %v1003_v48 = vadd.f32 %v1002_v46, %v2142_v8 }
 0xa48   :  { %v906_v49 = vpop.f32.mrf.mxu0 }
 0xa49   :  { %v907_v50 = vadd.f32 %v906_v49, %v2142_v8  ;;  %v1008_v51 = vsel %vm209_vm9, %v1003_v48, -inf }
 0xa4a   :  { %1009 = vmax.xlane.f32.xlu1 %v1008_v51 }
 0xa4b   :  { %v912_v53 = vsel %vm209_vm9, %v907_v50, -inf }
 0xa4c   :  { %913 = vmax.xlane.f32.xlu2 %v912_v53 }
 0xa50   :  { %v909_v55 = vpop.f32.mrf.mxu0 }
 0xa51   :  { %v910_v56 = vadd.f32 %v909_v55, %v2149_v13 }
 0xa53   :  { %v915_v57 = vsel %vm209_vm9, %v910_v56, -inf }
 0xa54   :  { %916 = vmax.xlane.f32.xlu1 %v915_v57 }
 0xa58   :  { %v1005_v58 = vpop.f32.mrf.mxu3 }
 0xa59   :  { %v1006_v59 = vadd.f32 %v1005_v58, %v2149_v13  ;;  %v1098_v60 = vpop.f32.mrf.mxu0 }
 0xa5a   :  { %v1099_v61 = vadd.f32 %v1098_v60, %v2142_v8 }
 0xa5b   :  { %v1011_v54 = vsel %vm209_vm9, %v1006_v59, -inf }
 0xa5c   :  { %1012 = vmax.xlane.f32.xlu0 %v1011_v54  ;;  %v1104_v0 = vsel %vm209_vm9, %v1099_v61, -inf }
 0xa60   :  { %v1194_v62 = vpop.f32.mrf.mxu3 }
 0xa61   :  { %v2401_v63 = vadd.f32 %v1194_v62, %v2142_v8  ;;  %v1101_v2 = vpop.f32.mrf.mxu0 }
 0xa62   :  { %v2407_v3 = vadd.f32 %v1101_v2, %v2149_v13 }
 0xa63   :  { %v1200_v1 = vsel %vm209_vm9, %v2401_v63, -inf }
 0xa64   :  { %1105 = vmax.xlane.f32.xlu0 %v1104_v0  ;;  %1201 = vmax.xlane.f32.xlu2 %v1200_v1  ;;  %v1107_v6 = vsel %vm209_vm9, %v2407_v3, -inf }
 0xa68   :  { %v1197_v4 = vpop.f32.mrf.mxu3 }
 0xa69   :  { %v1198_v5 = vadd.f32 %v1197_v4, %v2149_v13 }
 0xa6b   :  { %v1203_v8 = vsel %vm209_vm9, %v1198_v5, -inf }
 0xa6c   :  { %1108 = vmax.xlane.f32.xlu2 %v1107_v6  ;;  %1204 = vmax.xlane.f32.xlu1 %v1203_v8 }
 0xa84   :  { %1762 = vrot.lane.b32.xlu2 %v1761_v7, %s2646_s27 }
 0xabd   :  { %v1010_v9 = vpop.xlane.xlu1 %1009 }
 0xabe   :  { %v1014_v11 = vsub.f32 %v1003_v48, %v1010_v9 }
 0xabf   :  { %v914_v12 = vpop.xlane.xlu2 %913 }
 0xac0   :  { %v1016_v14 = vmul.f32 1.442695, %v1014_v11  ;;  %v918_v16 = vsub.f32 %v907_v50, %v914_v12 }
 0xac2   :  { %1851 = vpow2.f32 %v1016_v14  ;;  %v920_v17 = vmul.f32 1.442695, %v918_v16 }
 0xac4   :  { %1853 = vpow2.f32 %v920_v17 }
 0xac7   :  { %v917_v13 = vpop.xlane.xlu1 %916 }
 0xac8   :  { %v1852_v18 = vpop.eup %1851  ;;  %v919_v19 = vsub.f32 %v910_v56, %v917_v13 }
 0xac9   :  { %v1020_v20 = vsel %vm209_vm9, %v1852_v18, 0.0 }
 0xaca   :  { %v2417_v21 = vpop.eup %1853  ;;  %v922_v22 = vmul.f32 1.442695, %v919_v19  ;;  %1021 = vadd.xlane.f32.xlu0 %v1020_v20 }
 0xacb   :  { %v924_v23 = vsel %vm209_vm9, %v2417_v21, 0.0 }
 0xacc   :  { %1855 = vpow2.f32 %v922_v22  ;;  %925 = vadd.xlane.f32.xlu1 %v924_v23 }
 0xacf   :  { %v1013_v24 = vpop.xlane.xlu0 %1012 }
 0xad0   :  { %v1015_v25 = vsub.f32 %v1006_v59, %v1013_v24 }
 0xad2   :  { %v2421_v27 = vpop.eup %1855  ;;  %v1018_v28 = vmul.f32 1.442695, %v1015_v25 }
 0xad3   :  { %v927_v30 = vsel %vm209_vm9, %v2421_v27, 0.0 }
 0xad4   :  { %1857 = vpow2.f32 %v1018_v28  ;;  %928 = vadd.xlane.f32.xlu0 %v927_v30 }
 0xad7   :  { %v1106_v31 = vpop.xlane.xlu0 %1105  ;;  %v1202_v32 = vpop.xlane.xlu2 %1201 }
 0xad8   :  { %v1110_v33 = vsub.f32 %v1099_v61, %v1106_v31  ;;  %v1206_v43 = vsub.f32 %v2401_v63, %v1202_v32 }
 0xada   :  { %v1858_v47 = vpop.eup %1857  ;;  %v1112_v34 = vmul.f32 1.442695, %v1110_v33  ;;  %v1208_v45 = vmul.f32 1.442695, %v1206_v43 }
 0xadb   :  { %v1023_v35 = vsel %vm209_vm9, %v1858_v47, 0.0 }
 0xadc   :  { %1859 = vpow2.f32 %v1112_v34  ;;  %1024 = vadd.xlane.f32.xlu0 %v1023_v35  ;;  %v1697_v35 = vld [vmem:[%s2599_s6 + $0x38] sm:$0xff] }
 0xadd   :  { %1315 = vmatpush.msrb.mxu0 %v1697_v35 }
 0xadf   :  { %v1109_v36 = vpop.xlane.xlu2 %1108  ;;  %v1205_v40 = vpop.xlane.xlu1 %1204 }
 0xae0   :  { %v1207_v41 = vsub.f32 %v1198_v5, %v1205_v40  ;;  %v1111_v55 = vsub.f32 %v2407_v3, %v1109_v36  ;;  %v1696_v36 = vld [vmem:[%s2599_s6 + $0x30] sm:$0xff] }
 0xae1   :  { %1316 = vmatpush.msrb.mxu0 %v1696_v36 }
 0xae2   :  { %v2426_v52 = vpop.eup %1859  ;;  %v1210_v42 = vmul.f32 1.442695, %v1207_v41  ;;  %v1114_v57 = vmul.f32 1.442695, %v1111_v55 }
 0xae3   :  { %v1116_v26 = vsel %vm209_vm9, %v2426_v52, 0.0 }
 0xae4   :  { %1117 = vadd.xlane.f32.xlu2 %v1116_v26  ;;  %1861 = vpow2.f32 %v1210_v42  ;;  %v1694_v26 = vld [vmem:[%s2599_s6 + $0x20] sm:$0xff] }
 0xae5   :  { %1767 = vrot.lane.b32.xlu1 %v1761_v7, %s2647_s4  ;;  %1863 = vpow2.f32 %v1208_v45 }
 0xae7   :  { %v1763_v37 = vpop.permute.xlu2 %1762 }
 0xae8   :  { %v1764_v38 = vunpack.i.l.bf16 %v1763_v37  ;;  %v1765_v39 = vunpack.i.h.bf16 %v1763_v37 }
 0xaea   :  { %1056 = vmatpush.msra.mxu2 %v1764_v38  ;;  %v1862_v44 = vpop.eup %1861 }
 0xaeb   :  { %v1215_v46 = vsel %vm209_vm9, %v1862_v44, 0.0  ;;  %v1864_v48 = vpop.eup %1863 }
 0xaec   :  { %1057 = vmatpush.msra.mxu2 %v1765_v39  ;;  %v1212_v49 = vsel %vm209_vm9, %v1864_v48, 0.0 }
 0xaf0   :  { %1772 = vrot.lane.b32.xlu0 %v1761_v7, %s2648_s30 }
 0xb0f   :  { %1216 = vadd.xlane.f32.xlu1 %v1215_v46 }
 0xb1a   :  { %1213 = vadd.xlane.f32.xlu0 %v1212_v49 }
 0xb2e   :  { %1777 = vrot.lane.b32.xlu0 %v1761_v7, %s2649_s0 }
 0xb3d   :  { %v1022_v50 = vpop.xlane.xlu0 %1021 }
 0xb3e   :  { %1865 = vrcp.f32 %v1022_v50  ;;  %v1792_v50 = vld [vmem:[%s2600_s7 + $0x1] ss:$0 sm:$0xff] }
 0xb3f   :  { %1867 = vpow2.f32 %v1114_v57  ;;  %v926_v58 = vpop.xlane.xlu1 %925 }
 0xb44   :  { %v1866_v51 = vpop.eup %1865 }
 0xb45   :  { %v1028_v53 = vmul.f32 %v1866_v51, %v1852_v18  ;;  %v1868_v60 = vpop.eup %1867 }
 0xb46   :  { %v1119_v62 = vsel %vm209_vm9, %v1868_v60, 0.0 }
 0xb47   :  { %1680 = vmatmul.msk.f32.vlgmr.msra.gmra.mxu2 %vm209_vm9, %v1028_v53  ;;  %v929_v56 = vpop.xlane.xlu0 %928 }
 0xb4f   :  { %v1025_v59 = vpop.xlane.xlu0 %1024 }
 0xb50   :  { %1869 = vrcp.f32 %v1025_v59 }
 0xb51   :  { %1871 = vrcp.f32 %v926_v58 }
 0xb52   :  { %1873 = vrcp.f32 %v929_v56 }
 0xb56   :  { %v1870_v54 = vpop.eup %1869 }
 0xb57   :  { %v1768_v61 = vpop.permute.xlu1 %1767  ;;  %v1029_v63 = vmul.f32 %v1870_v54, %v1858_v47  ;;  %v1872_v0 = vpop.eup %1871 }
 0xb58   :  { %v1769_v1 = vunpack.i.l.bf16 %v1768_v61  ;;  %1120 = vadd.xlane.f32.xlu0 %v1119_v62  ;;  %v1770_v2 = vunpack.i.h.bf16 %v1768_v61  ;;  %v932_v3 = vmul.f32 %v1872_v0, %v2417_v21  ;;  %v1874_v4 = vpop.eup %1873  ;;  %v1118_v16 = vpop.xlane.xlu2 %1117 }
 0xb59   :  { %1681 = vmatmul.msk.f32.gmra.mxu2 %vm209_vm9, %v1029_v63  ;;  %v933_v8 = vmul.f32 %v1874_v4, %v2421_v27 }
 0xb5a   :  { %960 = vmatpush.msrb.mxu1 %v1769_v1 }
 0xb5c   :  { %961 = vmatpush.msrb.mxu1 %v1770_v2 }
 0xb5d   :  { %1674 = vmatmul.msk.f32.vlgmr.msrb.gmra.mxu1 %vm209_vm9, %v932_v3 }
 0xb62   :  { %v1773_v5 = vpop.permute.xlu0 %1772 }
 0xb63   :  { %v1774_v6 = vunpack.i.l.bf16 %v1773_v5  ;;  %v1775_v7 = vunpack.i.h.bf16 %v1773_v5  ;;  %v1705_v5 = vld [vmem:[%s2601_s8 + $0x30] sm:$0xff] }
 0xb65   :  { %1675 = vmatmul.msk.f32.gmra.mxu1 %vm209_vm9, %v933_v8  ;;  %1248 = vmatpush.msrb.mxu2 %v1774_v6  ;;  %v1704_v6 = vld [vmem:[%s2601_s8 + $0x28] sm:$0xff]  ;;  %v1703_v8 = vld [vmem:[%s2601_s8 + $0x20] sm:$0xff] }
 0xb67   :  { %1249 = vmatpush.msrb.mxu2 %v1775_v7 }
 0xb82   :  { %v1217_v11 = vpop.xlane.xlu1 %1216 }
 0xb8d   :  { %v1214_v9 = vpop.xlane.xlu0 %1213 }
 0xb8e   :  { %1875 = vrcp.f32 %v1214_v9 }
 0xb8f   :  { %1877 = vrcp.f32 %v1217_v11 }
 0xb90   :  { %1879 = vrcp.f32 %v1118_v16 }
 0xb94   :  { %v1876_v12 = vpop.eup %1875 }
 0xb95   :  { %v1220_v14 = vmul.f32 %v1876_v12, %v1864_v48  ;;  %v1878_v17 = vpop.eup %1877 }
 0xb96   :  { %v1221_v13 = vmul.f32 %v1878_v17, %v1862_v44  ;;  %v1880_v19 = vpop.eup %1879 }
 0xb97   :  { %1692 = vmatmul.msk.f32.vlgmr.msrb.gmra.mxu2 %vm209_vm9, %v1220_v14  ;;  %v1124_v22 = vmul.f32 %v1880_v19, %v2426_v52  ;;  %v1695_v52 = vld [vmem:[%s2599_s6 + $0x28] sm:$0xff]  ;;  %v1793_v19 = vld [vmem:[%s2605_s12 + $0x1] ss:$0 sm:$0xff] }
 0xb98   :  { %1317 = vmatpush.msrb.mxu0 %v1695_v52 }
 0xb9a   :  { %1318 = vmatpush.msrb.mxu0 %v1694_v26 }
 0xb9f   :  { %1693 = vmatmul.msk.f32.gmra.mxu2 %vm209_vm9, %v1221_v13 }
 0xba0   :  { %v1778_v18 = vpop.permute.xlu0 %1777 }
 0xba1   :  { %v1779_v20 = vunpack.i.l.bf16 %v1778_v18  ;;  %v1780_v21 = vunpack.i.h.bf16 %v1778_v18 }
 0xba3   :  { %1152 = vmatpush.msra.mxu1 %v1779_v20 }
 0xba5   :  { %1153 = vmatpush.msra.mxu1 %v1780_v21 }
 0xba6   :  { %1686 = vmatmul.msk.f32.vlgmr.msra.gmra.mxu1 %vm209_vm9, %v1124_v22  ;;  %v1794_v22 = vld [vmem:[%s2606_s13 + $0x1] ss:$0 sm:$0xff] }
 0xbca   :  { %v1059_v23 = vpop.f32.mrf.mxu2 }
 0xbcb   :  { %1259 = vrot.lane.b32.xlu2 %v1059_v23, %s2650_s3  ;;  %v1121_v24 = vpop.xlane.xlu0 %1120 }
 0xbcc   :  { %1881 = vrcp.f32 %v1121_v24 }
 0xbd2   :  { %v1882_v25 = vpop.eup %1881 }
 0xbd3   :  { %v1125_v27 = vmul.f32 %v1882_v25, %v1868_v60 }
 0xbd5   :  { %1687 = vmatmul.msk.f32.gmra.mxu1 %vm209_vm9, %v1125_v27 }
 0xbda   :  { %v963_v28 = vpop.f32.mrf.mxu1 }
 0xbdc   :  { %v1062_v30 = vpop.f32.mrf.mxu2 }
 0xbe2   :  { %v966_v32 = vpop.f32.mrf.mxu1 }
 0xc1a   :  { %v1251_v31 = vpop.f32.mrf.mxu2 }
 0xc1b   :  { %1275 = vrot.lane.b32.xlu2 %v1251_v31, %s2651_s1 }
 0xc22   :  { %v1254_v47 = vpop.f32.mrf.mxu2 }
 0xc23   :  { %1261 = vrot.lane.b32.xlu2 %v1062_v30, %s2650_s3  ;;  %v1155_v33 = vpop.f32.mrf.mxu1 }
 0xc24   :  { %1267 = vrot.lane.b32.xlu1 %v1155_v33, %s2652_s28 }
 0xc25   :  { %v1260_v37 = vpop.permute.xlu2 %1259 }
 0xc26   :  { %v1281_v38 = vsel %vm177_vm8, %v963_v28, %v1260_v37  ;;  %v1717_v37 = vld [vmem:[%s2603_s10 + $0x78] sm:$0xff] }
 0xc27   :  { %1471 = vmatpush.msrb.mxu3 %v1717_v37 }
 0xc2c   :  { %1277 = vrot.lane.b32.xlu1 %v1254_v47, %s2651_s1 }
 0xc52   :  { %v1158_v34 = vpop.f32.mrf.mxu1 }
 0xc53   :  { %1269 = vrot.lane.b32.xlu0 %v1158_v34, %s2652_s28 }
 0xc75   :  { %v1276_v40 = vpop.permute.xlu2 %1275 }
 0xc7d   :  { %v1262_v43 = vpop.permute.xlu2 %1261 }
 0xc7e   :  { %v1282_v44 = vsel %vm177_vm8, %v966_v32, %v1262_v43  ;;  %v1711_v43 = vld [vmem:[%s2603_s10 + $0x48] sm:$0xff] }
 0xc96   :  { %v1268_v39 = vpop.permute.xlu1 %1267 }
 0xc97   :  { %v1283_v41 = vsel %vm209_vm9, %v1281_v38, %v1268_v39  ;;  %v1716_v38 = vld [vmem:[%s2603_s10 + $0x70] sm:$0xff]  ;;  %v1715_v39 = vld [vmem:[%s2603_s10 + $0x68] sm:$0xff] }
 0xc98   :  { %v1285_v42 = vsel %vm583_vm10, %v1283_v41, %v1276_v40  ;;  %1472 = vmatpush.msrb.mxu3 %v1716_v38  ;;  %v1714_v40 = vld [vmem:[%s2603_s10 + $0x60] sm:$0xff]  ;;  %v1713_v41 = vld [vmem:[%s2603_s10 + $0x58] sm:$0xff] }
 0xc99   :  { %1699 = vmatmul.msk.f32.vlgmr.msrb.gmra.mxu0 %vm72_vm0, %v1285_v42  ;;  %v1712_v42 = vld [vmem:[%s2603_s10 + $0x50] sm:$0xff] }
 0xc9a   :  { %1473 = vmatpush.msrb.mxu3 %v1715_v39 }
 0xc9c   :  { %1474 = vmatpush.msrb.mxu3 %v1714_v40 }
 0xc9e   :  { %v1278_v46 = vpop.permute.xlu1 %1277  ;;  %1475 = vmatpush.msrb.mxu3 %v1713_v41 }
 0xca0   :  { %1476 = vmatpush.msrb.mxu3 %v1712_v42 }
 0xca2   :  { %1477 = vmatpush.msrb.mxu3 %v1711_v43 }
 0xcc5   :  { %v1270_v45 = vpop.permute.xlu0 %1269 }
 0xcc6   :  { %v1284_v48 = vsel %vm209_vm9, %v1282_v44, %v1270_v45  ;;  %v1710_v44 = vld [vmem:[%s2603_s10 + $0x40] sm:$0xff] }
 0xcc7   :  { %v1286_v49 = vsel %vm583_vm10, %v1284_v48, %v1278_v46  ;;  %1478 = vmatpush.msrb.mxu3 %v1710_v44  ;;  %v1795_v45 = vld [vmem:[%s2602_s9 + $0x1] ss:$0 sm:$0xff]  ;;  %s1620_s9 = sshll.u32 %s1938_s2, 4  ;;  %s1621_s9 = int_to_ptr.vmem [resolvable:$true] %s1620_s9 }
 0xcc8   :  { %1700 = vmatmul.msk.f32.gmra.mxu0 %vm72_vm0, %v1286_v49 }
 0xd16   :  { %v1320_v51 = vpop.f32.mrf.mxu0 }
 0xd17   :  { %v1321_v53 = vadd.f32 %v1792_v50, %v1320_v51 }
 0xd19   :  { %v1326_v55 = vadd.f32 %v1321_v53, %v2329_v15 }
 0xd1b   :  { %v1332_v56 = vsel %vm72_vm0, %v1326_v55, 0.0 }
 0xd1c   :  { %1333 = vadd.xlane.f32.xlu2 %v1332_v56 }
 0xd45   :  { %v1323_v57 = vpop.f32.mrf.mxu0 }
 0xd46   :  { %v1324_v58 = vadd.f32 %v1792_v50, %v1323_v57 }
 0xd48   :  { %v1327_v59 = vadd.f32 %v1324_v58, %v2334_v29  ;;  %v1706_v29 = vld [vmem:[%s2601_s8 + $0x38] sm:$0xff] }
 0xd49   :  { %1414 = vmatpush.msrb.mxu1 %v1706_v29  ;;  %v1796_v29 = vld [vmem:[%s2604_s11 + $0x1] ss:$0 sm:$0xff]  ;;  %s1622_s11 = sshll.u32 %s2613_s20, 4  ;;  %s1623_s11 = int_to_ptr.hbm [resolvable:$true] %s1622_s11 }
 0xd4a   :  { %v1335_v60 = vsel %vm72_vm0, %v1327_v59, 0.0 }
 0xd4b   :  { %1336 = vadd.xlane.f32.xlu1 %v1335_v60  ;;  %1415 = vmatpush.msrb.mxu1 %v1705_v5 }
 0xd4d   :  { %1416 = vmatpush.msrb.mxu1 %v1704_v6 }
 0xd4f   :  { %1417 = vmatpush.msrb.mxu1 %v1703_v8 }
 0xd8f   :  { %v1334_v54 = vpop.xlane.xlu2 %1333 }
 0xd90   :  { %v1338_v61 = vmul.f32 %v1334_v54, %v2052_v10 }
 0xd92   :  { %v1340_v62 = vsub.f32 %v1326_v55, %v1338_v61 }
 0xd94   :  { %v1342_v63 = vmul.f32 %v1340_v62, %v1340_v62 }
 0xd96   :  { %v1344_v0 = vsel %vm72_vm0, %v1342_v63, 0.0 }
 0xd97   :  { %1345 = vadd.xlane.f32.xlu0 %v1344_v0 }
 0xdbe   :  { %v1337_v1 = vpop.xlane.xlu1 %1336 }
 0xdbf   :  { %v1339_v15 = vmul.f32 %v1337_v1, %v2052_v10 }
 0xdc1   :  { %v1341_v2 = vsub.f32 %v1327_v59, %v1339_v15 }
 0xdc3   :  { %v1343_v3 = vmul.f32 %v1341_v2, %v1341_v2 }
 0xdc5   :  { %v1347_v4 = vsel %vm72_vm0, %v1343_v3, 0.0 }
 0xdc6   :  { %1348 = vadd.xlane.f32.xlu2 %v1347_v4 }
 0xe0a   :  { %v1346_v7 = vpop.xlane.xlu0 %1345 }
 0xe0b   :  { %v1350_v9 = vmul.f32 %v1346_v7, %v2052_v10 }
 0xe0d   :  { %v1352_v11 = vadd.f32 1e-12, %v1350_v9 }
 0xe0f   :  { %1883 = vrsqrt.f32 %v1352_v11  ;;  %vm1360_vm9 = vweird.f32 %v1352_v11 }
 0xe15   :  { %v1884_v12 = vpop.eup %1883 }
 0xe16   :  { %v1355_v14 = vmul.f32 %v1884_v12, %v1352_v11  ;;  %vm1361_vm8 = vweird.f32 %v1884_v12 }
 0xe17   :  { %vm1362_vm10 = vmor %vm1360_vm9, %vm1361_vm8 }
 0xe18   :  { %v1356_v16 = vmul.f32 %v1884_v12, %v1355_v14 }
 0xe1a   :  { %v1357_v17 = vmul.f32 0.5, %v1356_v16 }
 0xe1c   :  { %v1358_v13 = vsub.f32 1.5, %v1357_v17 }
 0xe1e   :  { %v1359_v18 = vmul.f32 %v1884_v12, %v1358_v13 }
 0xe20   :  { %v1363_v20 = vsel %vm1362_vm10, %v1884_v12, %v1359_v18 }
 0xe21   :  { %v1374_v21 = vmul.f32 %v1363_v20, %v1340_v62 }
 0xe23   :  { %v1379_v23 = vmul.f32 %v1793_v19, %v1374_v21 }
 0xe25   :  { %v2505_v24 = vadd.f32 %v1794_v22, %v1379_v23 }
 0xe27   :  { %1708 = vmatmul.msk.f32.vlgmr.msrb.gmra.mxu1 %vm72_vm0, %v2505_v24 }
 0xe39   :  { %v1349_v25 = vpop.xlane.xlu2 %1348 }
 0xe3a   :  { %v1351_v27 = vmul.f32 %v1349_v25, %v2052_v10 }
 0xe3c   :  { %v1353_v28 = vadd.f32 1e-12, %v1351_v27 }
 0xe3e   :  { %1885 = vrsqrt.f32 %v1353_v28  ;;  %vm1370_vm13 = vweird.f32 %v1353_v28 }
 0xe44   :  { %v1886_v30 = vpop.eup %1885 }
 0xe45   :  { %v1365_v31 = vmul.f32 %v1886_v30, %v1353_v28  ;;  %vm1371_vm12 = vweird.f32 %v1886_v30 }
 0xe46   :  { %vm1372_vm14 = vmor %vm1370_vm13, %vm1371_vm12 }
 0xe47   :  { %v1366_v32 = vmul.f32 %v1886_v30, %v1365_v31  ;;  %v1553_v31 = vld [vmem:[%s2609_s16 + $0x10] sm:$0xff] }
 0xe49   :  { %v1367_v33 = vmul.f32 0.5, %v1366_v32 }
 0xe4b   :  { %v1368_v47 = vsub.f32 1.5, %v1367_v33  ;;  %v1552_v33 = vld [vmem:[%s2609_s16 + $0x8] sm:$0xff] }
 0xe4d   :  { %v1369_v34 = vmul.f32 %v1886_v30, %v1368_v47  ;;  %v1551_v47 = vld [vmem:[%s2609_s16] sm:$0xff] }
 0xe4f   :  { %v1373_v35 = vsel %vm1372_vm14, %v1886_v30, %v1369_v34  ;;  %v1554_v30 = vld [vmem:[%s2609_s16 + $0x18] sm:$0xff] }
 0xe50   :  { %v1375_v36 = vmul.f32 %v1373_v35, %v1341_v2  ;;  %1574 = vmatpush.msra.mxu2 %v1554_v30 }
 0xe52   :  { %v1380_v52 = vmul.f32 %v1793_v19, %v1375_v36  ;;  %1575 = vmatpush.msra.mxu2 %v1553_v31 }
 0xe54   :  { %v1385_v26 = vadd.f32 %v1794_v22, %v1380_v52  ;;  %1576 = vmatpush.msra.mxu2 %v1552_v33 }
 0xe56   :  { %1709 = vmatmul.msk.f32.gmra.mxu1 %vm72_vm0, %v1385_v26  ;;  %1577 = vmatpush.msra.mxu2 %v1551_v47 }
 0xea4   :  { %v1419_v46 = vpop.f32.mrf.mxu1 }
 0xea5   :  { %v1420_v48 = vadd.f32 %v1795_v45, %v1419_v46 }
 0xea7   :  { %v1427_v49 = vmul.f32 0.044715, %v1420_v48  ;;  %v1425_v57 = vmul.f32 0.5, %v1420_v48 }
 0xea9   :  { %v1429_v50 = vmul.f32 %v1427_v49, %v1420_v48 }
 0xeab   :  { %v1431_v51 = vmul.f32 %v1429_v50, %v1420_v48 }
 0xead   :  { %v1433_v53 = vadd.f32 %v1431_v51, %v1420_v48 }
 0xeaf   :  { %v1435_v55 = vmul.f32 0.7978846, %v1433_v53 }
 0xeb1   :  { %1887 = vtanh.f32 %v1435_v55  ;;  %v1798_v55 = vld [vmem:[%s2608_s15 + $0x1] ss:$0 sm:$0xff] }
 0xeb7   :  { %v1888_v56 = vpop.eup %1887 }
 0xeb8   :  { %v1439_v58 = vadd.f32 1.0, %v1888_v56 }
 0xeba   :  { %v1441_v59 = vmul.f32 %v1439_v58, %v1425_v57 }
 0xebc   :  { %1719 = vmatmul.msk.f32.vlgmr.msrb.gmra.mxu3 %vm748_vm2, %v1441_v59 }
 0xed3   :  { %v1422_v60 = vpop.f32.mrf.mxu1 }
 0xed4   :  { %v1423_v54 = vadd.f32 %v1795_v45, %v1422_v60  ;;  %v1586_v60 = vld [vmem:[%s2611_s18 + $0x18] sm:$0xff] }
 0xed5   :  { %1606 = vmatpush.msra.mxu0 %v1586_v60 }
 0xed6   :  { %v1428_v61 = vmul.f32 0.044715, %v1423_v54  ;;  %v1426_v2 = vmul.f32 0.5, %v1423_v54 }
 0xed8   :  { %v1430_v62 = vmul.f32 %v1428_v61, %v1423_v54  ;;  %v1584_v61 = vld [vmem:[%s2611_s18 + $0x8] sm:$0xff] }
 0xeda   :  { %v1432_v63 = vmul.f32 %v1430_v62, %v1423_v54  ;;  %v1583_v62 = vld [vmem:[%s2611_s18] sm:$0xff] }
 0xedc   :  { %v1434_v0 = vadd.f32 %v1432_v63, %v1423_v54  ;;  %v1585_v54 = vld [vmem:[%s2611_s18 + $0x10] sm:$0xff]  ;;  %v1799_v63 = vld [vmem:[%s2610_s17] ss:$0 sm:$0xff] }
 0xedd   :  { %1607 = vmatpush.msra.mxu0 %v1585_v54 }
 0xede   :  { %v1436_v1 = vmul.f32 0.7978846, %v1434_v0 }
 0xedf   :  { %1608 = vmatpush.msra.mxu0 %v1584_v61 }
 0xee0   :  { %1889 = vtanh.f32 %v1436_v1 }
 0xee1   :  { %1609 = vmatpush.msra.mxu0 %v1583_v62 }
 0xee6   :  { %v1890_v15 = vpop.eup %1889 }
 0xee7   :  { %v1440_v3 = vadd.f32 1.0, %v1890_v15 }
 0xee9   :  { %v1442_v4 = vmul.f32 %v1440_v3, %v1426_v2  ;;  %v1800_v2 = vld [vmem:[%s2612_s19] ss:$0 sm:$0xff] }
 0xeeb   :  { %1720 = vmatmul.msk.f32.gmra.mxu3 %vm748_vm2, %v1442_v4 }
 0xf3f   :  { %v1480_v5 = vpop.f32.mrf.mxu3 }
 0xf40   :  { %v1481_v6 = vadd.f32 %v1796_v29, %v1480_v5 }
 0xf42   :  { %v1486_v8 = vadd.f32 %v1481_v6, %v2505_v24 }
 0xf44   :  { %v1492_v7 = vsel %vm72_vm0, %v1486_v8, 0.0 }
 0xf45   :  { %1493 = vadd.xlane.f32.xlu2 %v1492_v7 }
 0xf6e   :  { %v1483_v9 = vpop.f32.mrf.mxu3 }
 0xf6f   :  { %v1484_v11 = vadd.f32 %v1796_v29, %v1483_v9 }
 0xf71   :  { %v1487_v12 = vadd.f32 %v1484_v11, %v1385_v26 }
 0xf73   :  { %v1495_v14 = vsel %vm72_vm0, %v1487_v12, 0.0 }
 0xf74   :  { %1496 = vadd.xlane.f32.xlu1 %v1495_v14 }
 0xfb8   :  { %v1494_v16 = vpop.xlane.xlu2 %1493 }
 0xfb9   :  { %v1498_v17 = vmul.f32 %v1494_v16, %v2052_v10 }
 0xfbb   :  { %v1500_v13 = vsub.f32 %v1486_v8, %v1498_v17 }
 0xfbd   :  { %v1502_v18 = vmul.f32 %v1500_v13, %v1500_v13 }
 0xfbf   :  { %v1504_v19 = vsel %vm72_vm0, %v1502_v18, 0.0 }
 0xfc0   :  { %1505 = vadd.xlane.f32.xlu0 %v1504_v19 }
 0xfe7   :  { %v1497_v20 = vpop.xlane.xlu1 %1496 }
 0xfe8   :  { %v1499_v21 = vmul.f32 %v1497_v20, %v2052_v10 }
 0xfea   :  { %v1501_v22 = vsub.f32 %v1487_v12, %v1499_v21 }
 0xfec   :  { %v1503_v23 = vmul.f32 %v1501_v22, %v1501_v22 }
 0xfee   :  { %v1507_v24 = vsel %vm72_vm0, %v1503_v23, 0.0 }
 0xfef   :  { %1508 = vadd.xlane.f32.xlu1 %v1507_v24 }
0x1033   :  { %v1506_v25 = vpop.xlane.xlu0 %1505 }
0x1034   :  { %v1510_v27 = vmul.f32 %v1506_v25, %v2052_v10 }
0x1036   :  { %v1512_v28 = vadd.f32 1e-12, %v1510_v27 }
0x1038   :  { %1891 = vrsqrt.f32 %v1512_v28  ;;  %vm1520_vm1 = vweird.f32 %v1512_v28 }
0x103e   :  { %v1892_v32 = vpop.eup %1891 }
0x103f   :  { %v1515_v34 = vmul.f32 %v1892_v32, %v1512_v28  ;;  %vm1521_vm15 = vweird.f32 %v1892_v32 }
0x1040   :  { %vm1522_vm2 = vmor %vm1520_vm1, %vm1521_vm15 }
0x1041   :  { %v1516_v52 = vmul.f32 %v1892_v32, %v1515_v34 }
0x1043   :  { %v1517_v37 = vmul.f32 0.5, %v1516_v52 }
0x1045   :  { %v1518_v38 = vsub.f32 1.5, %v1517_v37 }
0x1047   :  { %v1519_v41 = vmul.f32 %v1892_v32, %v1518_v38 }
0x1049   :  { %v1523_v44 = vsel %vm1522_vm2, %v1892_v32, %v1519_v41 }
0x104a   :  { %v1534_v48 = vmul.f32 %v1523_v44, %v1500_v13 }
0x1062   :  { %v1509_v35 = vpop.xlane.xlu1 %1508 }
0x1063   :  { %v1511_v36 = vmul.f32 %v1509_v35, %v2052_v10  ;;  %v1797_v10 = vld [vmem:[%s2607_s14 + $0x1] ss:$0 sm:$0xff] }
0x1064   :  { %v1539_v51 = vmul.f32 %v1797_v10, %v1534_v48 }
0x1065   :  { %v1513_v26 = vadd.f32 1e-12, %v1511_v36 }
0x1066   :  { %v1544_v57 = vadd.f32 %v1798_v55, %v1539_v51 }
0x1067   :  { %1893 = vrsqrt.f32 %v1513_v26  ;;  %vm1530_vm4 = vweird.f32 %v1513_v26 }
0x106d   :  { %v1894_v39 = vpop.eup %1893 }
0x106e   :  { %v1525_v40 = vmul.f32 %v1894_v39, %v1513_v26  ;;  %vm1531_vm3 = vweird.f32 %v1894_v39 }
0x106f   :  { %vm1532_vm5 = vmor %vm1530_vm4, %vm1531_vm3 }
0x1070   :  { %v1526_v42 = vmul.f32 %v1894_v39, %v1525_v40 }
0x1072   :  { %v1527_v43 = vmul.f32 0.5, %v1526_v42 }
0x1074   :  { %v1528_v45 = vsub.f32 1.5, %v1527_v43 }
0x1076   :  { %v1529_v46 = vmul.f32 %v1894_v39, %v1528_v45 }
0x1078   :  { %v1533_v49 = vsel %vm1532_vm5, %v1894_v39, %v1529_v46 }
0x1079   :  { %v1535_v50 = vmul.f32 %v1533_v49, %v1501_v22 }
0x107b   :  { %v1540_v53 = vmul.f32 %v1797_v10, %v1535_v50 }
0x107d   :  { %v1545_v56 = vadd.f32 %v1798_v55, %v1540_v53 }
0x107f   :  { %v1547_v58 = vrot.slane %v1545_v56, 7 }
0x1081   :  { %v1550_v59 = vsel %vm1549_vm6, %v1544_v57, %v1547_v58 }
0x1082   :  { %1723 = vmatmul.msk.f32.vlgmr.msra.gmra.mxu2 %vm72_vm0, %v1550_v59 }
0x1105   :  { %v1579_v0 = vpop.f32.mrf.mxu2 }
0x1106   :  { %v1580_v1 = vadd.f32 %v1799_v63, %v1579_v0 }
0x1108   :  { %1895 = vtanh.f32 %v1580_v1 }
0x110e   :  { %v1896_v15 = vpop.eup %1895 }
0x110f   :  { %1724 = vmatmul.msk.f32.vlgmr.msra.gmra.mxu0 %vm72_vm0, %v1896_v15 }
0x118c   :  { %v1611_v3 = vpop.f32.mrf.mxu0 }
0x118d   :  { %v1612_v4 = vadd.f32 %v1800_v2, %v1611_v3 }
0x118f   :  { %1614 = vst [vmem:[#allocation2] sm:$0x3] %v1612_v4 }
0x1190   :  { %1625 = dma.vmem_to_hbm [thread:$0]  %s1621_s9, 32, %s1623_s11, [#allocation3]  }
0x1191   :  { %1921 = dma.done.wait [#allocation3], 32  }
0x1192   :  { %1922 = vsyncadd [#allocation3], 4294967264 }
0x1193   :  { %1630 = vsyncpa [#allocation3], 1 }

</bundles_post_ra>
